<compile_context>
chip_gen: v5e
topology: v5e:2x2
jax: 0.10.0
libtpu: 0.0.40
codegen_flags: <defaults>
</compile_context>

<pallas_src>
import functools

import jax
import jax.numpy as jnp
from jax.experimental import pallas as pl
from jax.experimental.pallas import tpu as pltpu

LN_EPS = 1e-5  # PyTorch nn.LayerNorm default


def _round_up(x, m):
    return ((x + m - 1) // m) * m


def _layernorm(x, gamma, beta):
    # E[x^2] - E[x]^2 form: the two lane-reductions are independent (shorter
    # VPU critical path than centering first). Clamp for safety vs cancellation.
    mu = jnp.mean(x, axis=-1, keepdims=True)
    ex2 = jnp.mean(x * x, axis=-1, keepdims=True)
    var = jnp.maximum(ex2 - mu * mu, 0.0)
    return (x - mu) * jax.lax.rsqrt(var + LN_EPS) * gamma + beta


def critic_kernel(x_ref, w1_ref, b1_ref, g1_ref, be1_ref,
                  w2a_ref, b2a_ref, g2_ref, be2_ref,
                  wq_ref, bq_ref, out_ref, *, input_dims, fc2_dims):
    # x = [state | action], (TILE_B, Din + Na)
    x = x_ref[...]

    # --- fc1 over the state part (action rows of w1 are zero) + LN + relu ---
    h1 = jnp.dot(x, w1_ref[...], preferred_element_type=jnp.float32) + b1_ref[...]
    h1 = _layernorm(h1, g1_ref[...], be1_ref[...])
    h1 = jnp.maximum(h1, 0.0)

    # --- fused fc2 / action_value: one MXU call on a block-diagonal weight ---
    a = x[:, input_dims:]                               # (TILE_B, Na) static lane slice
    h1a = jnp.concatenate([h1, a], axis=-1)             # (TILE_B, fc1 + Na)
    z = jnp.dot(h1a, w2a_ref[...], preferred_element_type=jnp.float32) + b2a_ref[...]
    h2 = z[:, :fc2_dims]                                # fc2(h1) + b2
    av = jnp.maximum(z[:, fc2_dims:], 0.0)              # relu(action_value)

    sv = _layernorm(h2, g2_ref[...], be2_ref[...])      # NOTE: no relu here (matches torch code)
    sa = jnp.maximum(sv + av, 0.0)                      # relu(add)

    # --- q head as VPU multiply + cross-lane reduce (no N=1 MXU matmul) ---
    q = jnp.sum(sa * wq_ref[...], axis=-1, keepdims=True) + bq_ref[...]
    # (For very large B a lane-dense (1, TILE_B) output layout would avoid the
    #  masked last-dim-1 stores; kept (TILE_B, 1) here for simplicity.)
    out_ref[...] = q.astype(out_ref.dtype)


def critic_forward(state, action, packed, *, tile_b=128):
    """Run the fused critic forward. `packed` comes from pack_params()."""
    B = state.shape[0]
    din = state.shape[1]
    na = action.shape[1]
    fc1 = packed["w1"].shape[1]
    fc2 = packed["g2"].shape[1]

    x = jnp.concatenate([state.astype(jnp.float32),
                         action.astype(jnp.float32)], axis=-1)

    # Batch tile: multiple of 8 sublanes, padded batch so the grid is exact.
    tb = max(8, min(tile_b, _round_up(B, 8)))
    bp = _round_up(B, tb)
    if bp != B:
        x = jnp.pad(x, ((0, bp - B), (0, 0)))
    grid = (pl.cdiv(bp, tb),)

    kern = functools.partial(critic_kernel, input_dims=din, fc2_dims=fc2)

    # Weights/bias/LN params: full-array blocks with constant index maps ->
    # DMA'd once, VMEM-resident across all batch tiles.
    def resident(p):
        return pl.BlockSpec(p.shape, lambda i: (0, 0))

    args = (x,
            packed["w1"], packed["b1"], packed["g1"], packed["be1"],
            packed["w2a"], packed["b2a"], packed["g2"], packed["be2"],
            packed["wq"], packed["bq"])

    out = pl.pallas_call(
        kern,
        out_shape=jax.ShapeDtypeStruct((bp, 1), jnp.float32),
        grid=grid,
        in_specs=[pl.BlockSpec((tb, din + na), lambda i: (i, 0))]
                 + [resident(p) for p in args[1:]],
        out_specs=pl.BlockSpec((tb, 1), lambda i: (i, 0)),
        compiler_params=pltpu.CompilerParams(
            dimension_semantics=("parallel",)),   # v7x: shard batch over both TCs
    )(*args)
    return out[:B]


def init_params(key, input_dims, fc1_dims, fc2_dims, n_actions):
    """Raw params mirroring the PyTorch module's init (weights stored as
    (in_features, out_features))."""
    ks = jax.random.split(key, 8)

    f1 = 1.0 / jnp.sqrt(jnp.float32(fc1_dims))    # fc1.weight.size(0) == fc1_dims
    f2 = 1.0 / jnp.sqrt(jnp.float32(fc2_dims))    # fc2.weight.size(0) == fc2_dims
    f3 = 0.003
    fa = 1.0 / jnp.sqrt(jnp.float32(n_actions))   # PyTorch default init for action_value

    u = lambda k, shape, lim: jax.random.uniform(k, shape, jnp.float32, -lim, lim)

    return {
        "w1": u(ks[0], (input_dims, fc1_dims), f1),
        "b1": u(ks[1], (1, fc1_dims), f1),
        "g1": jnp.ones((1, fc1_dims), jnp.float32),    # LayerNorm weight
        "be1": jnp.zeros((1, fc1_dims), jnp.float32),  # LayerNorm bias
        "w2": u(ks[2], (fc1_dims, fc2_dims), f2),
        "b2": u(ks[3], (1, fc2_dims), f2),
        "g2": jnp.ones((1, fc2_dims), jnp.float32),
        "be2": jnp.zeros((1, fc2_dims), jnp.float32),
        "wa": u(ks[4], (n_actions, fc2_dims), fa),
        "ba": u(ks[5], (1, fc2_dims), fa),
        "wq": u(ks[6], (fc2_dims, 1), f3),
        "bq": u(ks[7], (1, 1), f3),
    }


def pack_params(p):
    """One-time repack: zero-pad w1 for the concat input, build the
    block-diagonal [[w2,0],[0,wa]] fc2/action weight, and store wq as a row."""
    input_dims, fc1 = p["w1"].shape
    n_actions, fc2 = p["wa"].shape

    w1p = jnp.concatenate(
        [p["w1"], jnp.zeros((n_actions, fc1), jnp.float32)], axis=0)  # (Din+Na, fc1)

    w2a = jnp.zeros((fc1 + n_actions, 2 * fc2), jnp.float32)
    w2a = w2a.at[:fc1, :fc2].set(p["w2"])
    w2a = w2a.at[fc1:, fc2:].set(p["wa"])
    b2a = jnp.concatenate([p["b2"], p["ba"]], axis=-1)                # (1, 2*fc2)

    return {
        "w1": w1p, "b1": p["b1"], "g1": p["g1"], "be1": p["be1"],
        "w2a": w2a, "b2a": b2a, "g2": p["g2"], "be2": p["be2"],
        "wq": p["wq"].reshape(1, fc2), "bq": p["bq"],
    }


def critic_ref(state, action, p):
    """Pure-JAX reference (torch semantics: centered-variance LayerNorm)."""
    def ln(x, g, b):
        mu = jnp.mean(x, axis=-1, keepdims=True)
        var = jnp.mean((x - mu) ** 2, axis=-1, keepdims=True)
        return (x - mu) * jax.lax.rsqrt(var + LN_EPS) * g + b

    h1 = state @ p["w1"] + p["b1"]
    h1 = jnp.maximum(ln(h1, p["g1"], p["be1"]), 0.0)
    sv = ln(h1 @ p["w2"] + p["b2"], p["g2"], p["be2"])
    av = jnp.maximum(action @ p["wa"] + p["ba"], 0.0)
    sa = jnp.maximum(sv + av, 0.0)
    return sa @ p["wq"] + p["bq"]


if __name__ == "__main__":
    # Small shapes consistent with a DDPG critic; B=200 exercises the batch
    # grid (two 128-row tiles) and the padding path.
    B = 200
    input_dims = 32
    fc1_dims = 64
    fc2_dims = 32
    n_actions = 8

    key = jax.random.PRNGKey(0)
    k_state, k_action, k_params = jax.random.split(key, 3)

    state = jax.random.normal(k_state, (B, input_dims), jnp.float32)
    action = jax.random.normal(k_action, (B, n_actions), jnp.float32)

    raw = init_params(k_params, input_dims, fc1_dims, fc2_dims, n_actions)
    packed = pack_params(raw)

    out = critic_forward(state, action, packed, tile_b=128)
    jax.block_until_ready(out)

    ref = critic_ref(state, action, raw)
    assert out.shape == (B, 1), out.shape
    assert jnp.allclose(out, ref, atol=2e-4, rtol=2e-4), "mismatch vs JAX reference"

    print("KERNEL_OK")
</pallas_src>

<mosaic_0001>
module attributes {stable_mosaic.version = 11 : i64} {
  func.func @critic_kernel(%arg0: i32, %arg1: memref<128x40xf32, #tpu.memory_space<vmem>>, %arg2: memref<40x64xf32, #tpu.memory_space<vmem>>, %arg3: memref<1x64xf32, #tpu.memory_space<vmem>>, %arg4: memref<1x64xf32, #tpu.memory_space<vmem>>, %arg5: memref<1x64xf32, #tpu.memory_space<vmem>>, %arg6: memref<72x64xf32, #tpu.memory_space<vmem>>, %arg7: memref<1x64xf32, #tpu.memory_space<vmem>>, %arg8: memref<1x32xf32, #tpu.memory_space<vmem>>, %arg9: memref<1x32xf32, #tpu.memory_space<vmem>>, %arg10: memref<1x32xf32, #tpu.memory_space<vmem>>, %arg11: memref<1x1xf32, #tpu.memory_space<vmem>>, %arg12: memref<128x1xf32, #tpu.memory_space<vmem>>) attributes {dimension_semantics = [#tpu.dimension_semantics<parallel>], iteration_bounds = array<i64: 2>, scalar_prefetch = 0 : i64, scratch_operands = 0 : i64, tpu.core_type = #tpu.core_type<tc>, window_params = [{transform_indices = @transform_0, window_bounds = array<i64: 128, 40>}, {pipeline_mode = #tpu.pipeline_mode<synchronous>, transform_indices = @transform_1, window_bounds = array<i64: 40, 64>}, {pipeline_mode = #tpu.pipeline_mode<synchronous>, transform_indices = @transform_2, window_bounds = array<i64: 1, 64>}, {pipeline_mode = #tpu.pipeline_mode<synchronous>, transform_indices = @transform_3, window_bounds = array<i64: 1, 64>}, {pipeline_mode = #tpu.pipeline_mode<synchronous>, transform_indices = @transform_4, window_bounds = array<i64: 1, 64>}, {pipeline_mode = #tpu.pipeline_mode<synchronous>, transform_indices = @transform_5, window_bounds = array<i64: 72, 64>}, {pipeline_mode = #tpu.pipeline_mode<synchronous>, transform_indices = @transform_6, window_bounds = array<i64: 1, 64>}, {pipeline_mode = #tpu.pipeline_mode<synchronous>, transform_indices = @transform_7, window_bounds = array<i64: 1, 32>}, {pipeline_mode = #tpu.pipeline_mode<synchronous>, transform_indices = @transform_8, window_bounds = array<i64: 1, 32>}, {pipeline_mode = #tpu.pipeline_mode<synchronous>, transform_indices = @transform_9, window_bounds = array<i64: 1, 32>}, {pipeline_mode = #tpu.pipeline_mode<synchronous>, transform_indices = @transform_10, window_bounds = array<i64: 1, 1>}, {transform_indices = @transform_11, window_bounds = array<i64: 128, 1>}]} {
    %c0 = arith.constant 0 : index
    %c0_0 = arith.constant 0 : index
    %0 = vector.load %arg1[%c0, %c0_0] : memref<128x40xf32, #tpu.memory_space<vmem>>, vector<128x40xf32>
    %c0_1 = arith.constant 0 : index
    %c0_2 = arith.constant 0 : index
    %1 = vector.load %arg2[%c0_1, %c0_2] : memref<40x64xf32, #tpu.memory_space<vmem>>, vector<40x64xf32>
    %cst = arith.constant dense<0.000000e+00> : vector<128x64xf32>
    %2 = tpu.matmul %0, %1, %cst {dimension_numbers = #tpu.dot_dimension_numbers<[1], [0], [0], [1], [0, 0, 1, 1], [], []>} : vector<128x40xf32>, vector<40x64xf32>, vector<128x64xf32> -> vector<128x64xf32>
    %c0_3 = arith.constant 0 : index
    %c0_4 = arith.constant 0 : index
    %3 = vector.load %arg3[%c0_3, %c0_4] : memref<1x64xf32, #tpu.memory_space<vmem>>, vector<1x64xf32>
    %4 = vector.broadcast %3 : vector<1x64xf32> to vector<128x64xf32>
    %5 = arith.addf %2, %4 : vector<128x64xf32>
    %c0_5 = arith.constant 0 : index
    %c0_6 = arith.constant 0 : index
    %6 = vector.load %arg4[%c0_5, %c0_6] : memref<1x64xf32, #tpu.memory_space<vmem>>, vector<1x64xf32>
    %c0_7 = arith.constant 0 : index
    %c0_8 = arith.constant 0 : index
    %7 = vector.load %arg5[%c0_7, %c0_8] : memref<1x64xf32, #tpu.memory_space<vmem>>, vector<1x64xf32>
    %cst_9 = arith.constant dense<0.000000e+00> : vector<128xf32>
    %8 = vector.multi_reduction <add>, %5, %cst_9 [1] : vector<128x64xf32> to vector<128xf32>
    %9 = vector.shape_cast %8 : vector<128xf32> to vector<128x1xf32>
    %cst_10 = arith.constant 6.400000e+01 : f32
    %10 = vector.broadcast %cst_10 : f32 to vector<128x1xf32>
    %11 = arith.divf %9, %10 : vector<128x1xf32>
    %12 = arith.mulf %5, %5 : vector<128x64xf32>
    %cst_11 = arith.constant dense<0.000000e+00> : vector<128xf32>
    %13 = vector.multi_reduction <add>, %12, %cst_11 [1] : vector<128x64xf32> to vector<128xf32>
    %14 = vector.shape_cast %13 : vector<128xf32> to vector<128x1xf32>
    %cst_12 = arith.constant 6.400000e+01 : f32
    %15 = vector.broadcast %cst_12 : f32 to vector<128x1xf32>
    %16 = arith.divf %14, %15 : vector<128x1xf32>
    %17 = arith.mulf %11, %11 : vector<128x1xf32>
    %18 = arith.subf %16, %17 : vector<128x1xf32>
    %cst_13 = arith.constant 0.000000e+00 : f32
    %19 = vector.broadcast %cst_13 : f32 to vector<128x1xf32>
    %20 = arith.maximumf %18, %19 : vector<128x1xf32>
    %21 = vector.broadcast %11 : vector<128x1xf32> to vector<128x64xf32>
    %22 = arith.subf %5, %21 : vector<128x64xf32>
    %cst_14 = arith.constant 9.99999974E-6 : f32
    %23 = vector.broadcast %cst_14 : f32 to vector<128x1xf32>
    %24 = arith.addf %20, %23 : vector<128x1xf32>
    %25 = math.rsqrt %24 : vector<128x1xf32>
    %26 = vector.broadcast %25 : vector<128x1xf32> to vector<128x64xf32>
    %27 = arith.mulf %22, %26 : vector<128x64xf32>
    %28 = vector.broadcast %6 : vector<1x64xf32> to vector<128x64xf32>
    %29 = arith.mulf %27, %28 : vector<128x64xf32>
    %30 = vector.broadcast %7 : vector<1x64xf32> to vector<128x64xf32>
    %31 = arith.addf %29, %30 : vector<128x64xf32>
    %cst_15 = arith.constant 0.000000e+00 : f32
    %32 = vector.broadcast %cst_15 : f32 to vector<128x64xf32>
    %33 = arith.maximumf %31, %32 : vector<128x64xf32>
    %34 = vector.extract_strided_slice %0 {offsets = [0, 32], sizes = [128, 8], strides = [1, 1]} : vector<128x40xf32> to vector<128x8xf32>
    %35 = tpu.concatenate %33, %34 in 1 : vector<128x64xf32>, vector<128x8xf32> -> vector<128x72xf32>
    %c0_16 = arith.constant 0 : index
    %c0_17 = arith.constant 0 : index
    %36 = vector.load %arg6[%c0_16, %c0_17] : memref<72x64xf32, #tpu.memory_space<vmem>>, vector<72x64xf32>
    %cst_18 = arith.constant dense<0.000000e+00> : vector<128x64xf32>
    %37 = tpu.matmul %35, %36, %cst_18 {dimension_numbers = #tpu.dot_dimension_numbers<[1], [0], [0], [1], [0, 0, 1, 1], [], []>} : vector<128x72xf32>, vector<72x64xf32>, vector<128x64xf32> -> vector<128x64xf32>
    %c0_19 = arith.constant 0 : index
    %c0_20 = arith.constant 0 : index
    %38 = vector.load %arg7[%c0_19, %c0_20] : memref<1x64xf32, #tpu.memory_space<vmem>>, vector<1x64xf32>
    %39 = vector.broadcast %38 : vector<1x64xf32> to vector<128x64xf32>
    %40 = arith.addf %37, %39 : vector<128x64xf32>
    %41 = vector.extract_strided_slice %40 {offsets = [0, 0], sizes = [128, 32], strides = [1, 1]} : vector<128x64xf32> to vector<128x32xf32>
    %42 = vector.extract_strided_slice %40 {offsets = [0, 32], sizes = [128, 32], strides = [1, 1]} : vector<128x64xf32> to vector<128x32xf32>
    %cst_21 = arith.constant 0.000000e+00 : f32
    %43 = vector.broadcast %cst_21 : f32 to vector<128x32xf32>
    %44 = arith.maximumf %42, %43 : vector<128x32xf32>
    %c0_22 = arith.constant 0 : index
    %c0_23 = arith.constant 0 : index
    %45 = vector.load %arg8[%c0_22, %c0_23] : memref<1x32xf32, #tpu.memory_space<vmem>>, vector<1x32xf32>
    %c0_24 = arith.constant 0 : index
    %c0_25 = arith.constant 0 : index
    %46 = vector.load %arg9[%c0_24, %c0_25] : memref<1x32xf32, #tpu.memory_space<vmem>>, vector<1x32xf32>
    %cst_26 = arith.constant dense<0.000000e+00> : vector<128xf32>
    %47 = vector.multi_reduction <add>, %41, %cst_26 [1] : vector<128x32xf32> to vector<128xf32>
    %48 = vector.shape_cast %47 : vector<128xf32> to vector<128x1xf32>
    %cst_27 = arith.constant 3.200000e+01 : f32
    %49 = vector.broadcast %cst_27 : f32 to vector<128x1xf32>
    %50 = arith.divf %48, %49 : vector<128x1xf32>
    %51 = arith.mulf %41, %41 : vector<128x32xf32>
    %cst_28 = arith.constant dense<0.000000e+00> : vector<128xf32>
    %52 = vector.multi_reduction <add>, %51, %cst_28 [1] : vector<128x32xf32> to vector<128xf32>
    %53 = vector.shape_cast %52 : vector<128xf32> to vector<128x1xf32>
    %cst_29 = arith.constant 3.200000e+01 : f32
    %54 = vector.broadcast %cst_29 : f32 to vector<128x1xf32>
    %55 = arith.divf %53, %54 : vector<128x1xf32>
    %56 = arith.mulf %50, %50 : vector<128x1xf32>
    %57 = arith.subf %55, %56 : vector<128x1xf32>
    %cst_30 = arith.constant 0.000000e+00 : f32
    %58 = vector.broadcast %cst_30 : f32 to vector<128x1xf32>
    %59 = arith.maximumf %57, %58 : vector<128x1xf32>
    %60 = vector.broadcast %50 : vector<128x1xf32> to vector<128x32xf32>
    %61 = arith.subf %41, %60 : vector<128x32xf32>
    %cst_31 = arith.constant 9.99999974E-6 : f32
    %62 = vector.broadcast %cst_31 : f32 to vector<128x1xf32>
    %63 = arith.addf %59, %62 : vector<128x1xf32>
    %64 = math.rsqrt %63 : vector<128x1xf32>
    %65 = vector.broadcast %64 : vector<128x1xf32> to vector<128x32xf32>
    %66 = arith.mulf %61, %65 : vector<128x32xf32>
    %67 = vector.broadcast %45 : vector<1x32xf32> to vector<128x32xf32>
    %68 = arith.mulf %66, %67 : vector<128x32xf32>
    %69 = vector.broadcast %46 : vector<1x32xf32> to vector<128x32xf32>
    %70 = arith.addf %68, %69 : vector<128x32xf32>
    %71 = arith.addf %70, %44 : vector<128x32xf32>
    %cst_32 = arith.constant 0.000000e+00 : f32
    %72 = vector.broadcast %cst_32 : f32 to vector<128x32xf32>
    %73 = arith.maximumf %71, %72 : vector<128x32xf32>
    %c0_33 = arith.constant 0 : index
    %c0_34 = arith.constant 0 : index
    %74 = vector.load %arg10[%c0_33, %c0_34] : memref<1x32xf32, #tpu.memory_space<vmem>>, vector<1x32xf32>
    %75 = vector.broadcast %74 : vector<1x32xf32> to vector<128x32xf32>
    %76 = arith.mulf %73, %75 : vector<128x32xf32>
    %cst_35 = arith.constant dense<0.000000e+00> : vector<128xf32>
    %77 = vector.multi_reduction <add>, %76, %cst_35 [1] : vector<128x32xf32> to vector<128xf32>
    %78 = vector.shape_cast %77 : vector<128xf32> to vector<128x1xf32>
    %c0_36 = arith.constant 0 : index
    %c0_37 = arith.constant 0 : index
    %79 = vector.load %arg11[%c0_36, %c0_37] : memref<1x1xf32, #tpu.memory_space<vmem>>, vector<1x1xf32>
    %80 = vector.broadcast %79 : vector<1x1xf32> to vector<128x1xf32>
    %81 = arith.addf %78, %80 : vector<128x1xf32>
    %c0_38 = arith.constant 0 : index
    %c0_39 = arith.constant 0 : index
    %82 = vector.load %arg12[%c0_38, %c0_39] : memref<128x1xf32, #tpu.memory_space<vmem>>, vector<128x1xf32>
    tpu.vector_store %arg12[%c0_38, %c0_39], %81 {strides = array<i32>} : memref<128x1xf32, #tpu.memory_space<vmem>>, vector<128x1xf32>,
    return
  }
  func.func @transform_0(%arg0: i32) -> (i32, i32) {
    %c0_i32 = arith.constant 0 : i32
    %c0_i32_0 = arith.constant 0 : i32
    return %arg0, %c0_i32 : i32, i32
  }
  func.func @transform_1(%arg0: i32) -> (i32, i32) {
    %c0_i32 = arith.constant 0 : i32
    %c0_i32_0 = arith.constant 0 : i32
    %c0_i32_1 = arith.constant 0 : i32
    return %c0_i32, %c0_i32_0 : i32, i32
  }
  func.func @transform_2(%arg0: i32) -> (i32, i32) {
    %c0_i32 = arith.constant 0 : i32
    %c0_i32_0 = arith.constant 0 : i32
    %c0_i32_1 = arith.constant 0 : i32
    return %c0_i32, %c0_i32_0 : i32, i32
  }
  func.func @transform_3(%arg0: i32) -> (i32, i32) {
    %c0_i32 = arith.constant 0 : i32
    %c0_i32_0 = arith.constant 0 : i32
    %c0_i32_1 = arith.constant 0 : i32
    return %c0_i32, %c0_i32_0 : i32, i32
  }
  func.func @transform_4(%arg0: i32) -> (i32, i32) {
    %c0_i32 = arith.constant 0 : i32
    %c0_i32_0 = arith.constant 0 : i32
    %c0_i32_1 = arith.constant 0 : i32
    return %c0_i32, %c0_i32_0 : i32, i32
  }
  func.func @transform_5(%arg0: i32) -> (i32, i32) {
    %c0_i32 = arith.constant 0 : i32
    %c0_i32_0 = arith.constant 0 : i32
    %c0_i32_1 = arith.constant 0 : i32
    return %c0_i32, %c0_i32_0 : i32, i32
  }
  func.func @transform_6(%arg0: i32) -> (i32, i32) {
    %c0_i32 = arith.constant 0 : i32
    %c0_i32_0 = arith.constant 0 : i32
    %c0_i32_1 = arith.constant 0 : i32
    return %c0_i32, %c0_i32_0 : i32, i32
  }
  func.func @transform_7(%arg0: i32) -> (i32, i32) {
    %c0_i32 = arith.constant 0 : i32
    %c0_i32_0 = arith.constant 0 : i32
    %c0_i32_1 = arith.constant 0 : i32
    return %c0_i32, %c0_i32_0 : i32, i32
  }
  func.func @transform_8(%arg0: i32) -> (i32, i32) {
    %c0_i32 = arith.constant 0 : i32
    %c0_i32_0 = arith.constant 0 : i32
    %c0_i32_1 = arith.constant 0 : i32
    return %c0_i32, %c0_i32_0 : i32, i32
  }
  func.func @transform_9(%arg0: i32) -> (i32, i32) {
    %c0_i32 = arith.constant 0 : i32
    %c0_i32_0 = arith.constant 0 : i32
    %c0_i32_1 = arith.constant 0 : i32
    return %c0_i32, %c0_i32_0 : i32, i32
  }
  func.func @transform_10(%arg0: i32) -> (i32, i32) {
    %c0_i32 = arith.constant 0 : i32
    %c0_i32_0 = arith.constant 0 : i32
    %c0_i32_1 = arith.constant 0 : i32
    return %c0_i32, %c0_i32_0 : i32, i32
  }
  func.func @transform_11(%arg0: i32) -> (i32, i32) {
    %c0_i32 = arith.constant 0 : i32
    %c0_i32_0 = arith.constant 0 : i32
    return %arg0, %c0_i32 : i32, i32
  }
}

</mosaic_0001>

<bundles_post_ra>
// kernel: tpu_custom_call.1
= control target key start
LH: loop header
LB: loop body
LE: loop exit
PB: predicated region body
PF: predicated region fallthrough
CT: control target
= control target key end

     0   :  { %s2127_s19 = smov 0   ;;  %s3276_s0 = inlined_call_operand.vmem [shape: f32[256,40], index: 0, kind: input, shape index: {}]   ;;  %s3277_s1 = inlined_call_operand.vmem [shape: f32[40,64], index: 1, kind: input, shape index: {}]   ;;  %s3278_s2 = inlined_call_operand.vmem [shape: f32[1,64], index: 2, kind: input, shape index: {}]   ;;  %s3279_s3 = inlined_call_operand.vmem [shape: f32[1,64], index: 3, kind: input, shape index: {}]   ;;  %s3280_s4 = inlined_call_operand.vmem [shape: f32[1,64], index: 4, kind: input, shape index: {}]   ;;  %s3281_s5 = inlined_call_operand.vmem [shape: f32[72,64], index: 5, kind: input, shape index: {}]   ;;  %s3282_s6 = inlined_call_operand.vmem [shape: f32[1,64], index: 6, kind: input, shape index: {}]   ;;  %s3283_s7 = inlined_call_operand.vmem [shape: f32[1,32], index: 7, kind: input, shape index: {}]   ;;  %s3284_s8 = inlined_call_operand.vmem [shape: f32[1,32], index: 8, kind: input, shape index: {}]   ;;  %s3285_s9 = inlined_call_operand.vmem [shape: f32[1,32], index: 9, kind: input, shape index: {}]   ;;  %s3286_s10 = inlined_call_operand.<no memory space> [shape: f32[1,1], index: 10, kind: input, shape index: {}]   ;;  %s3287_s11 = inlined_call_operand.vmem [shape: f32[256,1], index: 11, kind: output, shape index: {}]  }
   0x1   :  { %v16_v0 = vstv %s3286_s10 }
   0x2   :  { %17 = vst [vmem:[#allocation2] sm:$0x1] %v16_v0 }
   0x3 LB: > { %s1907_s20 = sadd.s32 4294967295, %s2058_s19   ;;  %p1911_p0 = scmp.ge.s32.totalorder %s2058_s19, 1  ;;  %s2058_s19 = sphi %s2127_s19, %s23_s19  }
   0x4   : > { %p340_p1 = scmp.lt.s32.totalorder %s2058_s19, 3 }
   0x6   : > { %p341_p2 = pnand %p1911_p0, %p340_p1 }
   0x7   : > { %s1912_s24 = sshll.u32 (!%p341_p2), %s1907_s20, 4  ;;  %s2060_s16 = smov (!%p341_p2), 32  }
   0x8   : > { %344 = sbr.rel (%p341_p2) target bundleno = 1052 (0x41c), region = 64  ;;  %p381_p3 = scmp.lt.s32.totalorder (!%p341_p2), %s1912_s24, 31 }
   0x9   : > { %s2062_s27 = smov (!%p341_p2), 96  }
   0xd   : > { %v412_v1 = vld [vmem:[%s3277_s1 + $0x20] sm:$0xff]  ;;  %v411_v2 = vld [vmem:[%s3277_s1 + $0x18] sm:$0xff]  ;;  %v410_v3 = vld [vmem:[%s3277_s1 + $0x10] sm:$0xff]  ;;  %s3301_s24 = smov (!%p381_p3, %s1912_s24), 31  ;;  %vm417_vm0 = vcmask 326656   ;;  %vm533_vm1 = vcmask 523264  }
   0xe   : > { %477 = vmatpush.msra.mxu0 %v412_v1  ;;  %1950 = vmatpush.msra.mxu3 %v412_v1  ;;  %v409_v4 = vld [vmem:[%s3277_s1 + $0x8] sm:$0xff]  ;;  %s1913_s29 = sshll.u32 %s3301_s24, 3  ;;  %v408_v5 = vld [vmem:[%s3277_s1] sm:$0xff]  ;;  %vm1072_vm9 = vcmask 588800  }
   0xf   : > { %s2158_s15 = scalar_lea.vmem %s3276_s0, %s1913_s29  ;;  %v2223_v22 = vld [vmem:[%s3278_s2] ss:$0 sm:$0xff]  ;;  %s3215_s20 = scalar_lea.vmem %s3287_s11, %s1913_s29 }
  0x10   : > { %478 = vmatpush.msra.mxu0 %v411_v2  ;;  %1951 = vmatpush.msra.mxu3 %v411_v2  ;;  %v392_v6 = vld [vmem:[%s2158_s15] sm:$0xff]  ;;  %v401_v7 = vld [vmem:[%s2158_s15 + $0x48] sm:$0xff]  ;;  %v402_v9 = vld [vmem:[%s2158_s15 + $0x50] sm:$0xff] }
  0x11   : > { %995 = vrot.lane.b32.xlu1 %v392_v6, %s2060_s16  ;;  %1013 = vrot.lane.b32.xlu2 %v401_v7, %s2060_s16  ;;  %v393_v8 = vld [vmem:[%s2158_s15 + $0x8] sm:$0xff]  ;;  %v403_v10 = vld [vmem:[%s2158_s15 + $0x58] sm:$0xff] }
  0x12   : > { %479 = vmatpush.msra.mxu0 %v410_v3  ;;  %1952 = vmatpush.msra.mxu3 %v410_v3  ;;  %v394_v11 = vld [vmem:[%s2158_s15 + $0x10] sm:$0xff]  ;;  %v395_v12 = vld [vmem:[%s2158_s15 + $0x18] sm:$0xff]  ;;  %v404_v13 = vld [vmem:[%s2158_s15 + $0x60] sm:$0xff] }
  0x13   : > { %v396_v14 = vld [vmem:[%s2158_s15 + $0x20] sm:$0xff]  ;;  %v2187_v16 = vld [vmem:[%s2158_s15 + $0x68] sm:$0xff]  ;;  %v2197_v18 = vld [vmem:[%s2158_s15 + $0x70] sm:$0xff] }
  0x14   : > { %480 = vmatpush.msra.mxu0 %v409_v4  ;;  %1953 = vmatpush.msra.mxu3 %v409_v4  ;;  %v400_v15 = vld [vmem:[%s2158_s15 + $0x40] sm:$0xff]  ;;  %v2194_v17 = vld [vmem:[%s2158_s15 + $0x28] sm:$0xff]  ;;  %v2205_v19 = vld [vmem:[%s2158_s15 + $0x78] sm:$0xff] }
  0x15   : > { %1011 = vrot.lane.b32.xlu0 %v400_v15, %s2060_s16  ;;  %v2208_v20 = vld [vmem:[%s2158_s15 + $0x30] sm:$0xff]  ;;  %v2215_v21 = vld [vmem:[%s2158_s15 + $0x38] sm:$0xff] }
  0x16   : > { %481 = vmatpush.msra.mxu0 %v408_v5  ;;  %1954 = vmatpush.msra.mxu3 %v408_v5 }
  0x17   : > { %1916 = vmatmul.msk.f32.vlgmr.msra.gmra.mxu0 %vm417_vm0, %v392_v6  ;;  %1925 = vmatmul.msk.f32.vlgmr.msra.gmra.mxu3 %vm417_vm0, %v401_v7 }
  0x19   : > { %1017 = vrot.lane.b32.xlu1 %v403_v10, %s2060_s16  ;;  %1015 = vrot.lane.b32.xlu2 %v402_v9, %s2060_s16 }
  0x1d   : > { %997 = vrot.lane.b32.xlu0 %v393_v8, %s2060_s16 }
  0x1f   : > { %1917 = vmatmul.msk.f32.gmra.mxu0 %vm417_vm0, %v393_v8  ;;  %1926 = vmatmul.msk.f32.gmra.mxu3 %vm417_vm0, %v402_v9 }
  0x21   : > { %1001 = vrot.lane.b32.xlu1 %v395_v12, %s2060_s16  ;;  %999 = vrot.lane.b32.xlu2 %v394_v11, %s2060_s16 }
  0x25   : > { %1019 = vrot.lane.b32.xlu0 %v404_v13, %s2060_s16 }
  0x27   : > { %1918 = vmatmul.msk.f32.gmra.mxu0 %vm417_vm0, %v394_v11  ;;  %1927 = vmatmul.msk.f32.gmra.mxu3 %vm417_vm0, %v403_v10 }
  0x29   : > { %1003 = vrot.lane.b32.xlu1 %v396_v14, %s2060_s16 }
  0x2f   : > { %1919 = vmatmul.msk.f32.gmra.mxu0 %vm417_vm0, %v395_v12  ;;  %1928 = vmatmul.msk.f32.gmra.mxu3 %vm417_vm0, %v404_v13 }
  0x37   : > { %1920 = vmatmul.msk.f32.gmra.mxu0 %vm417_vm0, %v396_v14  ;;  %1929 = vmatmul.msk.f32.gmra.mxu3 %vm417_vm0, %v2187_v16 }
  0x3f   : > { %1921 = vmatmul.msk.f32.gmra.mxu0 %vm417_vm0, %v2194_v17  ;;  %1930 = vmatmul.msk.f32.gmra.mxu3 %vm417_vm0, %v2197_v18 }
  0x47   : > { %1931 = vmatmul.msk.f32.gmra.mxu3 %vm417_vm0, %v2205_v19  ;;  %1922 = vmatmul.msk.f32.gmra.mxu0 %vm417_vm0, %v2208_v20 }
  0x4f   : > { %1923 = vmatmul.msk.f32.gmra.mxu0 %vm417_vm0, %v2215_v21 }
  0x57   : > { %1924 = vmatmul.msk.f32.gmra.mxu0 %vm417_vm0, %v400_v15 }
  0x94   : > { %v483_v23 = vpop.f32.mrf.mxu0 }
  0x95   : > { %v2226_v24 = vadd.f32 %v2223_v22, %v483_v23 }
  0x97   : > { %v534_v25 = vsel %vm533_vm1, %v2226_v24, 0.0  ;;  %v605_v26 = vmul.f32 %v2226_v24, %v2226_v24 }
  0x98   : > { %535 = vadd.xlane.f32.xlu1 %v534_v25 }
  0x99   : > { %v621_v27 = vsel %vm533_vm1, %v605_v26, 0.0 }
  0x9a   : > { %v510_v28 = vpop.f32.mrf.mxu3  ;;  %622 = vadd.xlane.f32.xlu2 %v621_v27 }
  0x9b   : > { %v2234_v29 = vadd.f32 %v2223_v22, %v510_v28 }
  0x9c   : > { %v486_v30 = vpop.f32.mrf.mxu0 }
  0x9d   : > { %v2237_v31 = vadd.f32 %v2223_v22, %v486_v30  ;;  %v561_v32 = vsel %vm533_vm1, %v2234_v29, 0.0  ;;  %v614_v33 = vmul.f32 %v2234_v29, %v2234_v29 }
  0x9f   : > { %v537_v34 = vsel %vm533_vm1, %v2237_v31, 0.0  ;;  %v648_v35 = vsel %vm533_vm1, %v614_v33, 0.0  ;;  %v606_v38 = vmul.f32 %v2237_v31, %v2237_v31 }
  0xa0   : > { %538 = vadd.xlane.f32.xlu0 %v537_v34  ;;  %562 = vadd.xlane.f32.xlu1 %v561_v32 }
  0xa1   : > { %v624_v44 = vsel %vm533_vm1, %v606_v38, 0.0 }
  0xa2   : > { %v513_v36 = vpop.f32.mrf.mxu3  ;;  %649 = vadd.xlane.f32.xlu2 %v648_v35 }
  0xa3   : > { %v2247_v37 = vadd.f32 %v2223_v22, %v513_v36 }
  0xa4   : > { %v489_v39 = vpop.f32.mrf.mxu0 }
  0xa5   : > { %v2252_v40 = vadd.f32 %v2223_v22, %v489_v39  ;;  %v615_v41 = vmul.f32 %v2247_v37, %v2247_v37  ;;  %v564_v42 = vsel %vm533_vm1, %v2247_v37, 0.0 }
  0xa7   : > { %v651_v43 = vsel %vm533_vm1, %v615_v41, 0.0  ;;  %v607_v45 = vmul.f32 %v2252_v40, %v2252_v40  ;;  %v540_v50 = vsel %vm533_vm1, %v2252_v40, 0.0 }
  0xa8   : > { %652 = vadd.xlane.f32.xlu0 %v651_v43  ;;  %565 = vadd.xlane.f32.xlu1 %v564_v42 }
  0xa9   : > { %v627_v49 = vsel %vm533_vm1, %v607_v45, 0.0 }
  0xaa   : > { %v516_v46 = vpop.f32.mrf.mxu3  ;;  %625 = vadd.xlane.f32.xlu2 %v624_v44 }
  0xab   : > { %v2263_v47 = vadd.f32 %v2223_v22, %v516_v46 }
  0xac   : > { %v492_v48 = vpop.f32.mrf.mxu0 }
  0xad   : > { %v567_v51 = vsel %vm533_vm1, %v2263_v47, 0.0  ;;  %v616_v52 = vmul.f32 %v2263_v47, %v2263_v47  ;;  %v2273_v54 = vadd.f32 %v2223_v22, %v492_v48 }
  0xaf   : > { %v654_v58 = vsel %vm533_vm1, %v616_v52, 0.0  ;;  %v543_v59 = vsel %vm533_vm1, %v2273_v54, 0.0  ;;  %v608_v60 = vmul.f32 %v2273_v54, %v2273_v54 }
  0xb0   : > { %628 = vadd.xlane.f32.xlu0 %v627_v49  ;;  %541 = vadd.xlane.f32.xlu1 %v540_v50 }
  0xb1   : > { %v630_v1 = vsel %vm533_vm1, %v608_v60, 0.0 }
  0xb2   : > { %v519_v53 = vpop.f32.mrf.mxu3  ;;  %568 = vadd.xlane.f32.xlu2 %v567_v51 }
  0xb3   : > { %v2276_v55 = vadd.f32 %v2223_v22, %v519_v53  ;;  %v2061_v53 = vmov 64.0  }
  0xb4   : > { %v495_v56 = vpop.f32.mrf.mxu0  ;;  %1984 = vrcp.f32 %v2061_v53 }
  0xb5   : > { %v570_v57 = vsel %vm533_vm1, %v2276_v55, 0.0  ;;  %v617_v62 = vmul.f32 %v2276_v55, %v2276_v55  ;;  %v2295_v4 = vadd.f32 %v2223_v22, %v495_v56  ;;  %v2357_v56 = vpop.permute.xlu2 %1013 }
  0xb7   : > { %v657_v3 = vsel %vm533_vm1, %v617_v62, 0.0  ;;  %v546_v10 = vsel %vm533_vm1, %v2295_v4, 0.0  ;;  %v609_v13 = vmul.f32 %v2295_v4, %v2295_v4 }
  0xb8   : > { %571 = vadd.xlane.f32.xlu0 %v570_v57  ;;  %655 = vadd.xlane.f32.xlu1 %v654_v58  ;;  %v2359_v58 = vpop.permute.xlu0 %1011 }
  0xb9   : > { %v633_v27 = vsel %vm533_vm1, %v609_v13, 0.0  ;;  %v1062_v13 = vld [vmem:[%s3281_s5 + $0x18] sm:$0xff] }
  0xba   : > { %v522_v61 = vpop.f32.mrf.mxu3  ;;  %544 = vadd.xlane.f32.xlu2 %v543_v59  ;;  %v1985_v57 = vpop.eup %1984 }
  0xbb   : > { %v2298_v6 = vadd.f32 %v2223_v22, %v522_v61  ;;  %v583_v60 = vmul.f32 64.0, %v1985_v57  ;;  %vm587_vm2 = vweird.f32 %v1985_v57 }
  0xbc   : > { %v498_v63 = vpop.f32.mrf.mxu0 }
  0xbd   : > { %v2288_v0 = vadd.f32 %v2223_v22, %v498_v63  ;;  %v573_v12 = vsel %vm533_vm1, %v2298_v6, 0.0  ;;  %v618_v23 = vmul.f32 %v2298_v6, %v2298_v6  ;;  %v2365_v61 = vpop.permute.xlu2 %1015  ;;  %v584_v62 = vsub.f32 1.0, %v583_v60  ;;  %v1067_v63 = vld [vmem:[%s3281_s5 + $0x40] sm:$0xff] }
  0xbe   : > { %1128 = vmatpush.msra.mxu1 %v1067_v63  ;;  %1955 = vmatpush.msra.mxu2 %v1067_v63 }
  0xbf   : > { %v549_v2 = vsel %vm533_vm1, %v2288_v0, 0.0  ;;  %v660_v30 = vsel %vm533_vm1, %v618_v23, 0.0  ;;  %v610_v33 = vmul.f32 %v2288_v0, %v2288_v0  ;;  %v1061_v23 = vld [vmem:[%s3281_s5 + $0x10] sm:$0xff] }
  0xc0   : > { %550 = vadd.xlane.f32.xlu0 %v549_v2  ;;  %631 = vadd.xlane.f32.xlu1 %v630_v1  ;;  %v2372_v1 = vpop.permute.xlu0 %997  ;;  %v585_v2 = vmul.f32 %v1985_v57, %v584_v62 }
  0xc1   : > { %v636_v35 = vsel %vm533_vm1, %v610_v33, 0.0 }
  0xc2   : > { %v525_v5 = vpop.f32.mrf.mxu3  ;;  %658 = vadd.xlane.f32.xlu2 %v657_v3  ;;  %v1066_v3 = vld [vmem:[%s3281_s5 + $0x38] sm:$0xff] }
  0xc3   : > { %v2301_v7 = vadd.f32 %v2223_v22, %v525_v5  ;;  %1129 = vmatpush.msra.mxu1 %v1066_v3  ;;  %1956 = vmatpush.msra.mxu2 %v1066_v3  ;;  %v586_v5 = vadd.f32 %v1985_v57, %v585_v2 }
  0xc4   : > { %v501_v8 = vpop.f32.mrf.mxu0 }
  0xc5   : > { %v619_v9 = vmul.f32 %v2301_v7, %v2301_v7  ;;  %v576_v38 = vsel %vm533_vm1, %v2301_v7, 0.0  ;;  %v2333_v39 = vadd.f32 %v2223_v22, %v501_v8  ;;  %v1065_v8 = vld [vmem:[%s3281_s5 + $0x30] sm:$0xff] }
  0xc6   : > { %1130 = vmatpush.msra.mxu1 %v1065_v8  ;;  %1957 = vmatpush.msra.mxu2 %v1065_v8 }
  0xc7   : > { %v663_v11 = vsel %vm533_vm1, %v619_v9, 0.0  ;;  %v552_v43 = vsel %vm533_vm1, %v2333_v39, 0.0  ;;  %v611_v46 = vmul.f32 %v2333_v39, %v2333_v39  ;;  %v1064_v9 = vld [vmem:[%s3281_s5 + $0x28] sm:$0xff] }
  0xc8   : > { %664 = vadd.xlane.f32.xlu0 %v663_v11  ;;  %547 = vadd.xlane.f32.xlu1 %v546_v10  ;;  %v1063_v10 = vld [vmem:[%s3281_s5 + $0x20] sm:$0xff]  ;;  %v2396_v11 = vpop.permute.xlu0 %1019 }
  0xc9   : > { %v639_v49 = vsel %vm533_vm1, %v611_v46, 0.0  ;;  %1131 = vmatpush.msra.mxu1 %v1064_v9  ;;  %1958 = vmatpush.msra.mxu2 %v1064_v9 }
  0xca   : > { %574 = vadd.xlane.f32.xlu2 %v573_v12  ;;  %v528_v14 = vpop.f32.mrf.mxu3 }
  0xcb   : > { %v2313_v15 = vadd.f32 %v2223_v22, %v528_v14  ;;  %1132 = vmatpush.msra.mxu1 %v1063_v10  ;;  %1959 = vmatpush.msra.mxu2 %v1063_v10 }
  0xcc   : > { %v504_v25 = vpop.f32.mrf.mxu0 }
  0xcd   : > { %v579_v26 = vsel %vm533_vm1, %v2313_v15, 0.0  ;;  %v2321_v28 = vadd.f32 %v2223_v22, %v504_v25  ;;  %v620_v50 = vmul.f32 %v2313_v15, %v2313_v15  ;;  %1133 = vmatpush.msra.mxu1 %v1062_v13  ;;  %1960 = vmatpush.msra.mxu2 %v1062_v13 }
  0xcf   : > { %v612_v32 = vmul.f32 %v2321_v28, %v2321_v28  ;;  %v555_v44 = vsel %vm533_vm1, %v2321_v28, 0.0  ;;  %v666_v51 = vsel %vm533_vm1, %v620_v50, 0.0  ;;  %1134 = vmatpush.msra.mxu1 %v1061_v23  ;;  %1961 = vmatpush.msra.mxu2 %v1061_v23 }
  0xd0   : > { %580 = vadd.xlane.f32.xlu0 %v579_v26  ;;  %634 = vadd.xlane.f32.xlu1 %v633_v27  ;;  %v1060_v27 = vld [vmem:[%s3281_s5 + $0x8] sm:$0xff] }
  0xd1   : > { %v642_v34 = vsel %vm533_vm1, %v612_v32, 0.0  ;;  %1135 = vmatpush.msra.mxu1 %v1060_v27  ;;  %1962 = vmatpush.msra.mxu2 %v1060_v27  ;;  %v1059_v32 = vld [vmem:[%s3281_s5] sm:$0xff] }
  0xd2   : > { %661 = vadd.xlane.f32.xlu2 %v660_v30 }
  0xd3   : > { %1136 = vmatpush.msra.mxu1 %v1059_v32  ;;  %1963 = vmatpush.msra.mxu2 %v1059_v32 }
  0xd4   : > { %v507_v36 = vpop.f32.mrf.mxu0 }
  0xd5   : > { %v2336_v41 = vadd.f32 %v2223_v22, %v507_v36  ;;  %v2348_v22 = vpop.permute.xlu1 %995 }
  0xd7   : > { %v558_v42 = vsel %vm533_vm1, %v2336_v41, 0.0  ;;  %v613_v45 = vmul.f32 %v2336_v41, %v2336_v41 }
  0xd8   : > { %643 = vadd.xlane.f32.xlu0 %v642_v34  ;;  %637 = vadd.xlane.f32.xlu1 %v636_v35 }
  0xd9   : > { %v645_v48 = vsel %vm533_vm1, %v613_v45, 0.0 }
  0xda   : > { %577 = vadd.xlane.f32.xlu2 %v576_v38 }
  0xdd   : > { %v2355_v52 = vpop.permute.xlu1 %1017 }
  0xe0   : > { %559 = vadd.xlane.f32.xlu0 %v558_v42  ;;  %553 = vadd.xlane.f32.xlu1 %v552_v43 }
  0xe2   : > { %556 = vadd.xlane.f32.xlu2 %v555_v44 }
  0xe5   : > { %v2361_v59 = vpop.permute.xlu1 %1001 }
  0xe8   : > { %646 = vadd.xlane.f32.xlu0 %v645_v48  ;;  %640 = vadd.xlane.f32.xlu1 %v639_v49 }
  0xf0   : > { %667 = vadd.xlane.f32.xlu1 %v666_v51 }
  0xfa   : > { %1005 = vrot.lane.b32.xlu2 %v2194_v17, %s2060_s16  ;;  %v2377_v17 = vpop.permute.xlu1 %1003 }
  0xfc   : > { %1007 = vrot.lane.b32.xlu0 %v2208_v20, %s2060_s16  ;;  %v2381_v20 = vpop.permute.xlu2 %999 }
 0x104   : > { %1009 = vrot.lane.b32.xlu0 %v2215_v21, %s2060_s16  ;;  %v2391_v21 = vsel %vm587_vm2, %v1985_v57, %v586_v5 }
 0x109   : > { %1021 = vrot.lane.b32.xlu1 %v2187_v16, %s2060_s16 }
 0x10b   : > { %v536_v12 = vpop.xlane.xlu1 %535 }
 0x10c   : > { %v2402_v14 = vmul.f32 %v2391_v21, %v536_v12 }
 0x10d   : > { %v623_v16 = vpop.xlane.xlu2 %622 }
 0x10e   : > { %v685_v25 = vmul.f32 %v2402_v14, %v2402_v14  ;;  %v669_v26 = vmul.f32 %v623_v16, %v2391_v21 }
 0x110   : > { %v701_v30 = vsub.f32 %v669_v26, %v685_v25 }
 0x111   : > { %1023 = vrot.lane.b32.xlu1 %v2197_v18, %s2060_s16 }
 0x112   : > { %v717_v33 = vmax.f32 %v701_v30, 0.0 }
 0x113   : > { %v539_v34 = vpop.xlane.xlu0 %538  ;;  %v563_v35 = vpop.xlane.xlu1 %562 }
 0x114   : > { %v749_v36 = vadd.f32 1e-05, %v717_v33  ;;  %v2419_v38 = vmul.f32 %v2391_v21, %v563_v35  ;;  %v2427_v45 = vmul.f32 %v2391_v21, %v539_v34  ;;  %v733_v35 = vsub.f32 %v2226_v24, %v2402_v14  ;;  %v2457_v24 = vld [vmem:[%s3280_s4] ss:$0 sm:$0xff] }
 0x115   : > { %v650_v42 = vpop.xlane.xlu2 %649 }
 0x116   : > { %1986 = vrsqrt.f32 %v749_v36  ;;  %v694_v43 = vmul.f32 %v2419_v38, %v2419_v38  ;;  %v678_v18 = vmul.f32 %v650_v42, %v2391_v21  ;;  %v686_v51 = vmul.f32 %v2427_v45, %v2427_v45 }
 0x117   : > { %vm771_vm4 = vweird.f32 %v749_v36 }
 0x118   : > { %v710_v44 = vsub.f32 %v678_v18, %v694_v43  ;;  %v2449_v43 = vld [vmem:[%s3279_s3] ss:$0 sm:$0xff] }
 0x119   : > { %1025 = vrot.lane.b32.xlu1 %v2205_v19, %s2060_s16 }
 0x11a   : > { %v726_v46 = vmax.f32 %v710_v44, 0.0 }
 0x11b   : > { %v653_v48 = vpop.xlane.xlu0 %652  ;;  %v566_v49 = vpop.xlane.xlu1 %565 }
 0x11c   : > { %v1987_v50 = vpop.eup %1986  ;;  %v679_v53 = vmul.f32 %v653_v48, %v2391_v21  ;;  %v2433_v57 = vmul.f32 %v2391_v21, %v566_v49  ;;  %v758_v62 = vadd.f32 1e-05, %v726_v46 }
 0x11d   : > { %v766_v60 = vmul.f32 %v1987_v50, %v749_v36  ;;  %v626_v63 = vpop.xlane.xlu2 %625  ;;  %vm772_vm3 = vweird.f32 %v1987_v50 }
 0x11e   : > { %v695_v19 = vmul.f32 %v2433_v57, %v2433_v57  ;;  %v670_v2 = vmul.f32 %v626_v63, %v2391_v21  ;;  %1988 = vrsqrt.f32 %v758_v62  ;;  %vm773_vm5 = vmor %vm771_vm4, %vm772_vm3  ;;  %vm861_vm6 = vweird.f32 %v758_v62 }
 0x11f   : > { %v767_v3 = vmul.f32 %v1987_v50, %v766_v60 }
 0x120   : > { %v711_v5 = vsub.f32 %v679_v53, %v695_v19  ;;  %v702_v8 = vsub.f32 %v670_v2, %v686_v51 }
 0x121   : > { %v768_v9 = vmul.f32 0.5, %v767_v3 }
 0x122   : > { %v727_v10 = vmax.f32 %v711_v5, 0.0  ;;  %v718_v12 = vmax.f32 %v702_v8, 0.0 }
 0x123   : > { %v769_v13 = vsub.f32 1.5, %v768_v9  ;;  %v629_v16 = vpop.xlane.xlu0 %628  ;;  %v542_v23 = vpop.xlane.xlu1 %541 }
 0x124   : > { %v759_v25 = vadd.f32 1e-05, %v727_v10  ;;  %v2438_v26 = vadd.f32 1e-05, %v718_v12  ;;  %v2441_v27 = vmul.f32 %v2391_v21, %v542_v23  ;;  %v1989_v30 = vpop.eup %1988  ;;  %v671_v33 = vmul.f32 %v629_v16, %v2391_v21 }
 0x125   : > { %v770_v32 = vmul.f32 %v1987_v50, %v769_v13  ;;  %v569_v34 = vpop.xlane.xlu2 %568  ;;  %v856_v42 = vmul.f32 %v1989_v30, %v758_v62  ;;  %vm862_vm7 = vweird.f32 %v1989_v30 }
 0x126   : > { %1990 = vrsqrt.f32 %v759_v25  ;;  %v687_v36 = vmul.f32 %v2441_v27, %v2441_v27  ;;  %v2460_v49 = vmul.f32 %v2391_v21, %v569_v34  ;;  %vm2469_vm8 = vmor %vm861_vm6, %vm862_vm7  ;;  %vm871_vm10 = vweird.f32 %v759_v25 }
 0x127   : > { %v774_v18 = vsel %vm773_vm5, %v1987_v50, %v770_v32  ;;  %1992 = vrsqrt.f32 %v2438_v26  ;;  %v857_v44 = vmul.f32 %v1989_v30, %v856_v42  ;;  %v742_v32 = vsub.f32 %v2234_v29, %v2419_v38 }
 0x128   : > { %v925_v46 = vmul.f32 %v774_v18, %v733_v35  ;;  %v703_v48 = vsub.f32 %v671_v33, %v687_v36  ;;  %v696_v2 = vmul.f32 %v2460_v49, %v2460_v49  ;;  %vm781_vm11 = vweird.f32 %v2438_v26 }
 0x129   : > { %v858_v14 = vmul.f32 0.5, %v857_v44 }
 0x12a   : > { %v944_v50 = vmul.f32 %v2449_v43, %v925_v46  ;;  %v719_v51 = vmax.f32 %v703_v48, 0.0 }
 0x12b   : > { %v2463_v53 = vpop.xlane.xlu0 %571  ;;  %v656_v60 = vpop.xlane.xlu1 %655  ;;  %v859_v19 = vsub.f32 1.5, %v858_v14 }
 0x12c   : > { %v1991_v63 = vpop.eup %1990  ;;  %v680_v3 = vmul.f32 %v656_v60, %v2391_v21  ;;  %v751_v10 = vadd.f32 1e-05, %v719_v51  ;;  %v963_v13 = vadd.f32 %v2457_v24, %v944_v50 }
 0x12d   : > { %v1993_v5 = vpop.eup %1992  ;;  %v866_v9 = vmul.f32 %v1991_v63, %v759_v25  ;;  %v545_v12 = vpop.xlane.xlu2 %544  ;;  %v860_v16 = vmul.f32 %v1989_v30, %v859_v19  ;;  %vm872_vm12 = vweird.f32 %v1991_v63  ;;  %v743_v25 = vsub.f32 %v2247_v37, %v2433_v57 }
 0x12e   : > { %v776_v23 = vmul.f32 %v1993_v5, %v2438_v26  ;;  %1994 = vrsqrt.f32 %v751_v10  ;;  %v712_v35 = vsub.f32 %v680_v3, %v696_v2  ;;  %v979_v18 = vmax.f32 %v963_v13, 0.0  ;;  %vm2490_vm14 = vmor %vm871_vm10, %vm872_vm12 }
 0x12f   : > { %v867_v33 = vmul.f32 %v1991_v63, %v866_v9  ;;  %v864_v62 = vsel %vm2469_vm8, %v1989_v30, %v860_v16  ;;  %vm782_vm13 = vweird.f32 %v1993_v5  ;;  %v2483_v29 = vmul.f32 %v2391_v21, %v545_v12 }
 0x130   : > { %v777_v34 = vmul.f32 %v1993_v5, %v776_v23  ;;  %v2480_v36 = vmul.f32 %v864_v62, %v742_v32  ;;  %v728_v46 = vmax.f32 %v712_v35, 0.0  ;;  %v1043_v48 = vsel %vm533_vm1, %v979_v18, %v2348_v22  ;;  %vm783_vm15 = vmor %vm781_vm11, %vm782_vm13 }
 0x131   : > { %v868_v42 = vmul.f32 0.5, %v867_v33  ;;  %v688_v19 = vmul.f32 %v2483_v29, %v2483_v29  ;;  %1932 = vmatmul.msk.f32.vlgmr.msra.gmra.mxu1 %vm1072_vm9, %v1043_v48  ;;  %v734_v13 = vsub.f32 %v2237_v31, %v2427_v45  ;;  %vm791_vm0 = vweird.f32 %v751_v10 }
 0x132   : > { %v778_v44 = vmul.f32 0.5, %v777_v34  ;;  %v760_v60 = vadd.f32 1e-05, %v728_v46 }
 0x133   : > { %v869_v38 = vsub.f32 1.5, %v868_v42  ;;  %v2487_v30 = vpop.xlane.xlu0 %550  ;;  %v632_v14 = vpop.xlane.xlu1 %631 }
 0x134   : > { %v779_v51 = vsub.f32 1.5, %v778_v44  ;;  %v672_v2 = vmul.f32 %v632_v14, %v2391_v21  ;;  %v1995_v3 = vpop.eup %1994  ;;  %1996 = vrsqrt.f32 %v760_v60  ;;  %vm881_vm4 = vweird.f32 %v760_v60 }
 0x135   : > { %v870_v8 = vmul.f32 %v1991_v63, %v869_v38  ;;  %v2501_v22 = vpop.xlane.xlu2 %658  ;;  %v786_v12 = vmul.f32 %v1995_v3, %v751_v10  ;;  %vm792_vm2 = vweird.f32 %v1995_v3  ;;  %v735_v10 = vsub.f32 %v2252_v40, %v2441_v27 }
 0x136   : > { %v780_v9 = vmul.f32 %v1993_v5, %v779_v51  ;;  %v704_v26 = vsub.f32 %v672_v2, %v688_v19  ;;  %vm793_vm3 = vmor %vm791_vm0, %vm792_vm2 }
 0x137   : > { %v874_v16 = vsel %vm2490_vm14, %v1991_v63, %v870_v8  ;;  %v787_v33 = vmul.f32 %v1995_v3, %v786_v12 }
 0x138   : > { %v2509_v23 = vmul.f32 %v874_v16, %v743_v25  ;;  %v784_v32 = vsel %vm783_vm15, %v1993_v5, %v780_v9  ;;  %v720_v35 = vmax.f32 %v704_v26, 0.0  ;;  %v744_v26 = vsub.f32 %v2263_v47, %v2460_v49 }
 0x139   : > { %v926_v62 = vmul.f32 %v784_v32, %v734_v13  ;;  %v788_v34 = vmul.f32 0.5, %v787_v33 }
 0x13a   : > { %v1997_v18 = vpop.eup %1996  ;;  %v752_v45 = vadd.f32 1e-05, %v720_v35 }
 0x13b   : > { %v2511_v37 = vpop.xlane.xlu0 %664  ;;  %v548_v57 = vpop.xlane.xlu1 %547  ;;  %v945_v42 = vmul.f32 %v2449_v43, %v926_v62  ;;  %v789_v31 = vsub.f32 1.5, %v788_v34  ;;  %v876_v63 = vmul.f32 %v1997_v18, %v760_v60  ;;  %vm882_vm5 = vweird.f32 %v1997_v18 }
 0x13c   : > { %1998 = vrsqrt.f32 %v752_v45  ;;  %v2520_v14 = vmul.f32 %v2391_v21, %v548_v57  ;;  %vm2530_vm6 = vmor %vm881_vm4, %vm882_vm5  ;;  %v2544_v57 = vmul.f32 %v2391_v21, %v2487_v30  ;;  %vm801_vm7 = vweird.f32 %v752_v45 }
 0x13d   : > { %v2514_v44 = vpop.xlane.xlu2 %574  ;;  %v964_v5 = vadd.f32 %v2457_v24, %v945_v42  ;;  %v790_v46 = vmul.f32 %v1995_v3, %v789_v31  ;;  %v877_v38 = vmul.f32 %v1997_v18, %v876_v63 }
 0x13e   : > { %v689_v2 = vmul.f32 %v2520_v14, %v2520_v14  ;;  %v690_v47 = vmul.f32 %v2544_v57, %v2544_v57 }
 0x13f   : > { %v794_v48 = vsel %vm793_vm3, %v1995_v3, %v790_v46  ;;  %v980_v50 = vmax.f32 %v964_v5, 0.0  ;;  %v878_v19 = vmul.f32 0.5, %v877_v38 }
 0x140   : > { %v927_v51 = vmul.f32 %v794_v48, %v735_v10 }
 0x141   : > { %v1044_v8 = vsel %vm533_vm1, %v980_v50, %v2372_v1  ;;  %v879_v9 = vsub.f32 1.5, %v878_v19 }
 0x142   : > { %v946_v25 = vmul.f32 %v2449_v43, %v927_v51  ;;  %1933 = vmatmul.msk.f32.gmra.mxu1 %vm1072_vm9, %v1044_v8  ;;  %v1999_v3 = vpop.eup %1998 }
 0x143   : > { %v2528_v40 = vpop.xlane.xlu0 %580  ;;  %v635_v27 = vpop.xlane.xlu1 %634  ;;  %v880_v13 = vmul.f32 %v1997_v18, %v879_v9  ;;  %v796_v16 = vmul.f32 %v1999_v3, %v752_v45  ;;  %vm802_vm8 = vweird.f32 %v1999_v3 }
 0x144   : > { %v673_v60 = vmul.f32 %v635_v27, %v2391_v21  ;;  %v965_v1 = vadd.f32 %v2457_v24, %v946_v25  ;;  %vm803_vm10 = vmor %vm801_vm7, %vm802_vm8 }
 0x145   : > { %v2535_v32 = vpop.xlane.xlu2 %661  ;;  %v884_v62 = vsel %vm2530_vm6, %v1997_v18, %v880_v13  ;;  %v797_v34 = vmul.f32 %v1999_v3, %v796_v16 }
 0x146   : > { %v705_v33 = vsub.f32 %v673_v60, %v689_v2  ;;  %v981_v35 = vmax.f32 %v965_v1, 0.0  ;;  %v2548_v5 = vmul.f32 %v884_v62, %v744_v26  ;;  %v2569_v26 = vmul.f32 %v2391_v21, %v2463_v53 }
 0x147   : > { %v798_v31 = vmul.f32 0.5, %v797_v34 }
 0x148   : > { %v721_v42 = vmax.f32 %v705_v33, 0.0  ;;  %v1045_v63 = vsel %vm533_vm1, %v981_v35, %v2381_v20  ;;  %v736_v20 = vsub.f32 %v2273_v54, %v2483_v29  ;;  %v697_v53 = vmul.f32 %v2569_v26, %v2569_v26 }
 0x149   : > { %v799_v49 = vsub.f32 1.5, %v798_v31 }
 0x14a   : > { %v753_v46 = vadd.f32 1e-05, %v721_v42  ;;  %1934 = vmatmul.msk.f32.gmra.mxu1 %vm1072_vm9, %v1045_v63 }
 0x14b   : > { %v644_v18 = vpop.xlane.xlu0 %643  ;;  %v638_v10 = vpop.xlane.xlu1 %637  ;;  %v800_v30 = vmul.f32 %v1999_v3, %v799_v49 }
 0x14c   : > { %2000 = vrsqrt.f32 %v753_v46  ;;  %v674_v45 = vmul.f32 %v638_v10, %v2391_v21  ;;  %vm811_vm11 = vweird.f32 %v753_v46  ;;  %v676_v54 = vmul.f32 %v644_v18, %v2391_v21 }
 0x14d   : > { %v2554_v38 = vpop.xlane.xlu2 %577  ;;  %v804_v48 = vsel %vm803_vm10, %v1999_v3, %v800_v30 }
 0x14e   : > { %v706_v50 = vsub.f32 %v674_v45, %v690_v47  ;;  %v928_v51 = vmul.f32 %v804_v48, %v736_v20  ;;  %v681_v47 = vmul.f32 %v2501_v22, %v2391_v21  ;;  %v737_v45 = vsub.f32 %v2295_v4, %v2520_v14 }
 0x150   : > { %v722_v19 = vmax.f32 %v706_v50, 0.0  ;;  %v947_v8 = vmul.f32 %v2449_v43, %v928_v51 }
 0x152   : > { %v2001_v2 = vpop.eup %2000  ;;  %v754_v9 = vadd.f32 1e-05, %v722_v19  ;;  %v966_v60 = vadd.f32 %v2457_v24, %v947_v8 }
 0x153   : > { %v806_v25 = vmul.f32 %v2001_v2, %v753_v46  ;;  %v560_v27 = vpop.xlane.xlu0 %559  ;;  %v554_v12 = vpop.xlane.xlu1 %553  ;;  %vm812_vm12 = vweird.f32 %v2001_v2 }
 0x154   : > { %2002 = vrsqrt.f32 %v754_v9  ;;  %v2562_v29 = vmul.f32 %v2391_v21, %v560_v27  ;;  %v982_v33 = vmax.f32 %v966_v60, 0.0  ;;  %v2572_v34 = vmul.f32 %v2391_v21, %v554_v12  ;;  %vm2574_vm13 = vmor %vm811_vm11, %vm812_vm12 }
 0x155   : > { %v807_v13 = vmul.f32 %v2001_v2, %v806_v25  ;;  %v557_v16 = vpop.xlane.xlu2 %556  ;;  %v713_v27 = vsub.f32 %v681_v47, %v697_v53  ;;  %vm821_vm14 = vweird.f32 %v754_v9 }
 0x156   : > { %v2565_v3 = vmul.f32 %v2391_v21, %v557_v16  ;;  %v693_v42 = vmul.f32 %v2562_v29, %v2562_v29  ;;  %v1046_v63 = vsel %vm533_vm1, %v982_v33, %v2361_v59  ;;  %v691_v18 = vmul.f32 %v2572_v34, %v2572_v34 }
 0x157   : > { %v808_v1 = vmul.f32 0.5, %v807_v13  ;;  %1935 = vmatmul.msk.f32.gmra.mxu1 %vm1072_vm9, %v1046_v63  ;;  %v729_v35 = vmax.f32 %v713_v27, 0.0  ;;  %v682_v63 = vmul.f32 %v2535_v32, %v2391_v21 }
 0x158   : > { %v692_v31 = vmul.f32 %v2565_v3, %v2565_v3 }
 0x159   : > { %v809_v62 = vsub.f32 1.5, %v808_v1 }
 0x15a   : > { %v2003_v46 = vpop.eup %2002  ;;  %v708_v59 = vsub.f32 %v676_v54, %v692_v31 }
 0x15b   : > { %v810_v49 = vmul.f32 %v2001_v2, %v809_v62  ;;  %v647_v10 = vpop.xlane.xlu0 %646  ;;  %v641_v30 = vpop.xlane.xlu1 %640  ;;  %v816_v20 = vmul.f32 %v2003_v46, %v754_v9  ;;  %vm822_vm15 = vweird.f32 %v2003_v46  ;;  %v738_v9 = vsub.f32 %v2288_v0, %v2544_v57 }
 0x15c   : > { %v677_v48 = vmul.f32 %v647_v10, %v2391_v21  ;;  %v675_v22 = vmul.f32 %v641_v30, %v2391_v21  ;;  %v724_v19 = vmax.f32 %v708_v59, 0.0  ;;  %vm823_vm0 = vmor %vm821_vm14, %vm822_vm15  ;;  %v2611_v10 = vadd.f32 1e-05, %v729_v35 }
 0x15d   : > { %v814_v50 = vsel %vm2574_vm13, %v2001_v2, %v810_v49  ;;  %v817_v51 = vmul.f32 %v2003_v46, %v816_v20  ;;  %v2600_v2 = vmul.f32 %v2391_v21, %v2514_v44 }
 0x15e   : > { %v709_v8 = vsub.f32 %v677_v48, %v693_v42  ;;  %v929_v25 = vmul.f32 %v814_v50, %v737_v45  ;;  %v707_v12 = vsub.f32 %v675_v22, %v691_v18  ;;  %v756_v13 = vadd.f32 1e-05, %v724_v19  ;;  %v1006_v22 = vpop.permute.xlu2 %1005 }
 0x15f   : > { %v818_v60 = vmul.f32 0.5, %v817_v51  ;;  %v698_v31 = vmul.f32 %v2600_v2, %v2600_v2  ;;  %vm891_vm12 = vweird.f32 %v2611_v10 }
 0x160   : > { %v725_v4 = vmax.f32 %v709_v8, 0.0  ;;  %v948_v14 = vmul.f32 %v2449_v43, %v929_v25  ;;  %v723_v16 = vmax.f32 %v707_v12, 0.0  ;;  %2004 = vrsqrt.f32 %v756_v13 }
 0x161   : > { %v819_v1 = vsub.f32 1.5, %v818_v60  ;;  %v714_v0 = vsub.f32 %v682_v63, %v698_v31  ;;  %vm841_vm2 = vweird.f32 %v756_v13 }
 0x162   : > { %v757_v54 = vadd.f32 1e-05, %v725_v4  ;;  %v755_v33 = vadd.f32 1e-05, %v723_v16  ;;  %v967_v62 = vadd.f32 %v2457_v24, %v948_v14 }
 0x163   : > { %v820_v42 = vmul.f32 %v2003_v46, %v819_v1  ;;  %v730_v51 = vmax.f32 %v714_v0, 0.0 }
 0x164   : > { %2006 = vrsqrt.f32 %v757_v54  ;;  %v983_v53 = vmax.f32 %v967_v62, 0.0  ;;  %vm851_vm4 = vweird.f32 %v757_v54  ;;  %vm831_vm6 = vweird.f32 %v755_v33 }
 0x165   : > { %2008 = vrsqrt.f32 %v755_v33  ;;  %v824_v44 = vsel %vm823_vm0, %v2003_v46, %v820_v42  ;;  %v2621_v46 = vmul.f32 %v2391_v21, %v2554_v38 }
 0x166   : > { %v1047_v47 = vsel %vm533_vm1, %v983_v53, %v2377_v17  ;;  %v930_v49 = vmul.f32 %v824_v44, %v738_v9  ;;  %v2005_v18 = vpop.eup %2004  ;;  %2010 = vrsqrt.f32 %v2611_v10  ;;  %v683_v17 = vmul.f32 %v2511_v37, %v2391_v21 }
 0x167   : > { %1936 = vmatmul.msk.f32.gmra.mxu1 %vm1072_vm9, %v1047_v47  ;;  %v836_v57 = vmul.f32 %v2005_v18, %v756_v13  ;;  %vm842_vm3 = vweird.f32 %v2005_v18  ;;  %v699_v37 = vmul.f32 %v2621_v46, %v2621_v46  ;;  %v2634_v9 = vadd.f32 1e-05, %v730_v51 }
 0x168   : > { %v949_v30 = vmul.f32 %v2449_v43, %v930_v49  ;;  %vm2627_vm8 = vmor %vm841_vm2, %vm842_vm3  ;;  %v2642_v53 = vmul.f32 %v2391_v21, %v2528_v40  ;;  %v740_v44 = vsub.f32 %v2321_v28, %v2565_v3  ;;  %v668_v49 = vpop.xlane.xlu1 %667 }
 0x169   : > { %v837_v59 = vmul.f32 %v2005_v18, %v836_v57  ;;  %v715_v42 = vsub.f32 %v683_v17, %v699_v37  ;;  %2012 = vrsqrt.f32 %v2634_v9  ;;  %vm901_vm15 = vweird.f32 %v2634_v9 }
 0x16a   : > { %v2007_v45 = vpop.eup %2006  ;;  %v968_v48 = vadd.f32 %v2457_v24, %v949_v30 }
 0x16b   : > { %v2009_v20 = vpop.eup %2008  ;;  %v846_v32 = vmul.f32 %v2007_v45, %v757_v54  ;;  %v838_v19 = vmul.f32 0.5, %v837_v59  ;;  %vm852_vm5 = vweird.f32 %v2007_v45  ;;  %v739_v54 = vsub.f32 %v2333_v39, %v2572_v34 }
 0x16c   : > { %v826_v50 = vmul.f32 %v2009_v20, %v755_v33  ;;  %v984_v25 = vmax.f32 %v968_v48, 0.0  ;;  %vm832_vm7 = vweird.f32 %v2009_v20  ;;  %v2631_v1 = vpop.eup %2010  ;;  %vm853_vm10 = vmor %vm851_vm4, %vm852_vm5  ;;  %v741_v33 = vsub.f32 %v2336_v41, %v2562_v29 }
 0x16d   : > { %v847_v8 = vmul.f32 %v2007_v45, %v846_v32  ;;  %v839_v12 = vsub.f32 1.5, %v838_v19  ;;  %vm833_vm11 = vmor %vm831_vm6, %vm832_vm7  ;;  %v886_v41 = vmul.f32 %v2631_v1, %v2611_v10  ;;  %v700_v29 = vmul.f32 %v2642_v53, %v2642_v53 }
 0x16e   : > { %v827_v27 = vmul.f32 %v2009_v20, %v826_v50  ;;  %v1048_v4 = vsel %vm533_vm1, %v984_v25, %v1006_v22  ;;  %v731_v40 = vmax.f32 %v715_v42, 0.0  ;;  %v684_v39 = vmul.f32 %v668_v49, %v2391_v21  ;;  %v1008_v3 = vpop.permute.xlu0 %1007 }
 0x16f   : > { %v848_v60 = vmul.f32 0.5, %v847_v8  ;;  %1937 = vmatmul.msk.f32.gmra.mxu1 %vm1072_vm9, %v1048_v4  ;;  %v840_v14 = vmul.f32 %v2005_v18, %v839_v12  ;;  %v887_v59 = vmul.f32 %v2631_v1, %v886_v41  ;;  %v2013_v51 = vpop.eup %2012  ;;  %v954_v4 = vmul.f32 %v2449_v43, %v2509_v23 }
 0x170   : > { %v828_v38 = vmul.f32 0.5, %v827_v27  ;;  %v2662_v17 = vadd.f32 1e-05, %v731_v40  ;;  %v716_v50 = vsub.f32 %v684_v39, %v700_v29  ;;  %vm892_vm13 = vweird.f32 %v2631_v1 }
 0x171   : > { %v849_v13 = vsub.f32 1.5, %v848_v60  ;;  %v844_v31 = vsel %vm2627_vm8, %v2005_v18, %v840_v14  ;;  %v888_v25 = vmul.f32 0.5, %v887_v59  ;;  %v896_v60 = vmul.f32 %v2013_v51, %v2634_v9  ;;  %vm893_vm14 = vmor %vm891_vm12, %vm892_vm13 }
 0x172   : > { %v829_v62 = vsub.f32 1.5, %v828_v38  ;;  %v932_v18 = vmul.f32 %v844_v31, %v740_v44  ;;  %2014 = vrsqrt.f32 %v2662_v17  ;;  %v732_v12 = vmax.f32 %v716_v50, 0.0 }
 0x173   : > { %v850_v35 = vmul.f32 %v2007_v45, %v849_v13  ;;  %v889_v37 = vsub.f32 1.5, %v888_v25  ;;  %v897_v13 = vmul.f32 %v2013_v51, %v896_v60  ;;  %v973_v42 = vadd.f32 %v2457_v24, %v954_v4 }
 0x174   : > { %v830_v63 = vmul.f32 %v2009_v20, %v829_v62  ;;  %v951_v32 = vmul.f32 %v2449_v43, %v932_v18  ;;  %v764_v14 = vadd.f32 1e-05, %v732_v12  ;;  %v745_v44 = vsub.f32 %v2276_v55, %v2569_v26  ;;  %v2720_v12 = vld [vmem:[%s3282_s6] ss:$0 sm:$0xff] }
 0x175   : > { %v854_v47 = vsel %vm853_vm10, %v2007_v45, %v850_v35  ;;  %v898_v10 = vmul.f32 0.5, %v897_v13  ;;  %vm902_vm0 = vweird.f32 %v2013_v51  ;;  %vm911_vm3 = vweird.f32 %v2662_v17 }
 0x176   : > { %v834_v0 = vsel %vm833_vm11, %v2009_v20, %v830_v63  ;;  %v933_v57 = vmul.f32 %v854_v47, %v741_v33  ;;  %v953_v20 = vmul.f32 %v2449_v43, %v2480_v36  ;;  %v970_v27 = vadd.f32 %v2457_v24, %v951_v32  ;;  %v1010_v16 = vpop.permute.xlu0 %1009  ;;  %vm903_vm2 = vmor %vm901_vm15, %vm902_vm0 }
 0x177   : > { %v931_v30 = vmul.f32 %v834_v0, %v739_v54  ;;  %v890_v33 = vmul.f32 %v2631_v1, %v889_v37  ;;  %2016 = vrsqrt.f32 %v764_v14  ;;  %v989_v63 = vmax.f32 %v973_v42, 0.0 }
 0x178   : > { %v952_v34 = vmul.f32 %v2449_v43, %v933_v57  ;;  %v972_v8 = vadd.f32 %v2457_v24, %v953_v20  ;;  %v986_v38 = vmax.f32 %v970_v27, 0.0  ;;  %v2015_v62 = vpop.eup %2014  ;;  %v955_v54 = vmul.f32 %v2449_v43, %v2548_v5 }
 0x179   : > { %v950_v28 = vmul.f32 %v2449_v43, %v931_v30  ;;  %v906_v31 = vmul.f32 %v2015_v62, %v2662_v17  ;;  %v899_v47 = vsub.f32 1.5, %v898_v10  ;;  %v1053_v57 = vsel %vm533_vm1, %v989_v63, %v2365_v61 }
 0x17a   : > { %v971_v45 = vadd.f32 %v2457_v24, %v952_v34  ;;  %v1050_v23 = vsel %vm533_vm1, %v986_v38, %v1010_v16  ;;  %v974_v41 = vadd.f32 %v2457_v24, %v955_v54  ;;  %v746_v61 = vsub.f32 %v2298_v6, %v2600_v2 }
 0x17b   : > { %v969_v48 = vadd.f32 %v2457_v24, %v950_v28  ;;  %v907_v49 = vmul.f32 %v2015_v62, %v906_v31  ;;  %v900_v5 = vmul.f32 %v2013_v51, %v899_v47  ;;  %vm912_vm4 = vweird.f32 %v2015_v62  ;;  %v1022_v2 = vpop.permute.xlu1 %1021 }
 0x17c   : > { %v987_v21 = vmax.f32 %v971_v45, 0.0  ;;  %v990_v30 = vmax.f32 %v974_v41, 0.0  ;;  %vm913_vm5 = vmor %vm911_vm3, %vm912_vm4  ;;  %v747_v6 = vsub.f32 %v2301_v7, %v2621_v46  ;;  %vm921_vm6 = vweird.f32 %v764_v14 }
 0x17d   : > { %v985_v22 = vmax.f32 %v969_v48, 0.0  ;;  %v2017_v0 = vpop.eup %2016  ;;  %v908_v18 = vmul.f32 0.5, %v907_v49  ;;  %v904_v26 = vsel %vm903_vm2, %v2013_v51, %v900_v5  ;;  %v748_v7 = vsub.f32 %v2313_v15, %v2642_v53 }
 0x17e   : > { %v1051_v19 = vsel %vm533_vm1, %v987_v21, %v2359_v58  ;;  %v988_v58 = vmax.f32 %v972_v8, 0.0  ;;  %v1054_v34 = vsel %vm533_vm1, %v990_v30, %v2355_v52  ;;  %v938_v28 = vmul.f32 %v904_v26, %v746_v61 }
 0x17f   : > { %v1049_v36 = vsel %vm533_vm1, %v985_v22, %v1008_v3  ;;  %1940 = vmatmul.msk.f32.vlgmr.msra.gmra.mxu2 %vm1072_vm9, %v1051_v19  ;;  %v909_v40 = vsub.f32 1.5, %v908_v18  ;;  %vm922_vm7 = vweird.f32 %v2017_v0  ;;  %vm1204_vm10 = vcmask 261120  }
 0x180   : > { %1938 = vmatmul.msk.f32.gmra.mxu1 %vm1072_vm9, %v1049_v36  ;;  %v1052_v35 = vsel %vm533_vm1, %v988_v58, %v2357_v56  ;;  %v894_v56 = vsel %vm893_vm14, %v2631_v1, %v890_v33  ;;  %v916_v1 = vmul.f32 %v2017_v0, %v764_v14  ;;  %v957_v59 = vmul.f32 %v2449_v43, %v938_v28  ;;  %vm923_vm8 = vmor %vm921_vm6, %vm922_vm7 }
 0x181   : > { %v937_v29 = vmul.f32 %v894_v56, %v745_v44  ;;  %v910_v3 = vmul.f32 %v2015_v62, %v909_v40 }
 0x182   : > { %v917_v39 = vmul.f32 %v2017_v0, %v916_v1  ;;  %v976_v50 = vadd.f32 %v2457_v24, %v957_v59 }
 0x183   : > { %v956_v55 = vmul.f32 %v2449_v43, %v937_v29  ;;  %v914_v32 = vsel %vm913_vm5, %v2015_v62, %v910_v3  ;;  %v1024_v25 = vpop.permute.xlu1 %1023 }
 0x184   : > { %v918_v45 = vmul.f32 0.5, %v917_v39  ;;  %v939_v17 = vmul.f32 %v914_v32, %v747_v6  ;;  %v992_v51 = vmax.f32 %v976_v50, 0.0 }
 0x185   : > { %v975_v9 = vadd.f32 %v2457_v24, %v956_v55 }
 0x186   : > { %v919_v48 = vsub.f32 1.5, %v918_v45  ;;  %v958_v22 = vmul.f32 %v2449_v43, %v939_v17  ;;  %v1056_v46 = vsel %vm533_vm1, %v992_v51, %v1022_v2  ;;  %v2063_v2 = vmov 32.0  }
 0x187   : > { %1941 = vmatmul.msk.f32.gmra.mxu2 %vm1072_vm9, %v1052_v35  ;;  %v991_v20 = vmax.f32 %v975_v9, 0.0  ;;  %2018 = vrcp.f32 %v2063_v2 }
 0x188   : > { %1939 = vmatmul.msk.f32.gmra.mxu1 %vm1072_vm9, %v1050_v23  ;;  %v920_v21 = vmul.f32 %v2017_v0, %v919_v48 }
 0x189   : > { %v1055_v52 = vsel %vm533_vm1, %v991_v20, %v2396_v11  ;;  %v977_v11 = vadd.f32 %v2457_v24, %v958_v22 }
 0x18a   : > { %v924_v19 = vsel %vm923_vm8, %v2017_v0, %v920_v21 }
 0x18b   : > { %v940_v8 = vmul.f32 %v924_v19, %v748_v7  ;;  %v993_v36 = vmax.f32 %v977_v11, 0.0  ;;  %v1026_v58 = vpop.permute.xlu1 %1025 }
 0x18d   : > { %v959_v27 = vmul.f32 %v2449_v43, %v940_v8  ;;  %v1057_v60 = vsel %vm533_vm1, %v993_v36, %v1024_v25  ;;  %v2019_v21 = vpop.eup %2018 }
 0x18e   : > { %v1254_v22 = vmul.f32 32.0, %v2019_v21 }
 0x18f   : > { %1942 = vmatmul.msk.f32.gmra.mxu2 %vm1072_vm9, %v1053_v57  ;;  %v978_v15 = vadd.f32 %v2457_v24, %v959_v27 }
 0x190   : > { %v1255_v19 = vsub.f32 1.0, %v1254_v22 }
 0x191   : > { %v994_v14 = vmax.f32 %v978_v15, 0.0 }
 0x192   : > { %v1256_v8 = vmul.f32 %v2019_v21, %v1255_v19 }
 0x193   : > { %v1058_v16 = vsel %vm533_vm1, %v994_v14, %v1026_v58  ;;  %vm1258_vm1 = vweird.f32 %v2019_v21 }
 0x194   : > { %v1257_v27 = vadd.f32 %v2019_v21, %v1256_v8 }
 0x197   : > { %1943 = vmatmul.msk.f32.gmra.mxu2 %vm1072_vm9, %v1054_v34 }
 0x19f   : > { %1944 = vmatmul.msk.f32.gmra.mxu2 %vm1072_vm9, %v1055_v52 }
 0x1a7   : > { %1945 = vmatmul.msk.f32.gmra.mxu2 %vm1072_vm9, %v1056_v46 }
 0x1ae   : > { %v1138_v53 = vpop.f32.mrf.mxu1 }
 0x1af   : > { %1946 = vmatmul.msk.f32.gmra.mxu2 %vm1072_vm9, %v1057_v60  ;;  %v2726_v4 = vadd.f32 %v2720_v12, %v1138_v53  ;;  %v2817_v53 = vsel %vm1258_vm1, %v2019_v21, %v1257_v27 }
 0x1b1   : > { %v1205_v43 = vsel %vm1204_vm10, %v2726_v4, 0.0  ;;  %v1186_v37 = vmax.f32 %v2726_v4, 0.0  ;;  %v1276_v38 = vmul.f32 %v2726_v4, %v2726_v4 }
 0x1b2   : > { %1206 = vadd.xlane.f32.xlu1 %v1205_v43 }
 0x1b3   : > { %1666 = vrot.lane.b32.xlu2 %v1186_v37, %s2062_s27  ;;  %v1292_v24 = vsel %vm1204_vm10, %v1276_v38, 0.0 }
 0x1b4   : > { %1293 = vadd.xlane.f32.xlu0 %v1292_v24 }
 0x1b7   : > { %1947 = vmatmul.msk.f32.gmra.mxu2 %vm1072_vm9, %v1058_v16 }
 0x1bf   : > { %v1141_v13 = vpop.f32.mrf.mxu1 }
 0x1c0   : > { %v2738_v62 = vadd.f32 %v2720_v12, %v1141_v13 }
 0x1c2   : > { %v1208_v35 = vsel %vm1204_vm10, %v2738_v62, 0.0  ;;  %v1187_v42 = vmax.f32 %v2738_v62, 0.0  ;;  %v1277_v31 = vmul.f32 %v2738_v62, %v2738_v62 }
 0x1c3   : > { %1209 = vadd.xlane.f32.xlu0 %v1208_v35 }
 0x1c4   : > { %v1295_v63 = vsel %vm1204_vm10, %v1277_v31, 0.0 }
 0x1c7   : > { %v1144_v33 = vpop.f32.mrf.mxu1 }
 0x1c8   : > { %v2745_v23 = vadd.f32 %v2720_v12, %v1144_v33 }
 0x1ca   : > { %v1188_v10 = vmax.f32 %v2745_v23, 0.0  ;;  %v1211_v54 = vsel %vm1204_vm10, %v2745_v23, 0.0  ;;  %v1278_v56 = vmul.f32 %v2745_v23, %v2745_v23 }
 0x1cb   : > { %1668 = vrot.lane.b32.xlu1 %v1187_v42, %s2062_s27 }
 0x1cc   : > { %v1298_v47 = vsel %vm1204_vm10, %v1278_v56, 0.0 }
 0x1d4   : > { %v1147_v44 = vpop.f32.mrf.mxu1 }
 0x1d5   : > { %v2758_v49 = vadd.f32 %v2720_v12, %v1147_v44 }
 0x1d7   : > { %1670 = vrot.lane.b32.xlu0 %v1188_v10, %s2062_s27  ;;  %v1189_v0 = vmax.f32 %v2758_v49, 0.0  ;;  %v1279_v57 = vmul.f32 %v2758_v49, %v2758_v49  ;;  %v1214_v41 = vsel %vm1204_vm10, %v2758_v49, 0.0 }
 0x1d9   : > { %v1301_v29 = vsel %vm1204_vm10, %v1279_v57, 0.0 }
 0x1dc   : > { %1296 = vadd.xlane.f32.xlu2 %v1295_v63 }
 0x1e4   : > { %1212 = vadd.xlane.f32.xlu2 %v1211_v54  ;;  %v1150_v5 = vpop.f32.mrf.mxu1 }
 0x1e5   : > { %v2768_v18 = vadd.f32 %v2720_v12, %v1150_v5  ;;  %v2835_v5 = vld [vmem:[%s3283_s7] ss:$0 sm:$0xff] }
 0x1e7   : > { %v1217_v1 = vsel %vm1204_vm10, %v2768_v18, 0.0  ;;  %v1190_v40 = vmax.f32 %v2768_v18, 0.0  ;;  %v1280_v39 = vmul.f32 %v2768_v18, %v2768_v18 }
 0x1e9   : > { %v1304_v61 = vsel %vm1204_vm10, %v1280_v39, 0.0 }
 0x1ec   : > { %v1153_v30 = vpop.f32.mrf.mxu1 }
 0x1ed   : > { %v2773_v55 = vadd.f32 %v2720_v12, %v1153_v30  ;;  %v2840_v30 = vld [vmem:[%s3284_s8] ss:$0 sm:$0xff] }
 0x1ef   : > { %v1191_v26 = vmax.f32 %v2773_v55, 0.0  ;;  %v1220_v34 = vsel %vm1204_vm10, %v2773_v55, 0.0  ;;  %v1281_v28 = vmul.f32 %v2773_v55, %v2773_v55 }
 0x1f1   : > { %v1307_v45 = vsel %vm1204_vm10, %v1281_v28, 0.0 }
 0x1f5   : > { %1299 = vadd.xlane.f32.xlu1 %v1298_v47 }
 0x1fc   : > { %1672 = vrot.lane.b32.xlu2 %v1189_v0, %s2062_s27 }
 0x1fd   : > { %1215 = vadd.xlane.f32.xlu1 %v1214_v41  ;;  %v1156_v9 = vpop.f32.mrf.mxu1 }
 0x1fe   : > { %v2787_v3 = vadd.f32 %v2720_v12, %v1156_v9 }
 0x200   : > { %v1282_v20 = vmul.f32 %v2787_v3, %v2787_v3  ;;  %v1192_v59 = vmax.f32 %v2787_v3, 0.0  ;;  %v1223_v6 = vsel %vm1204_vm10, %v2787_v3, 0.0 }
 0x201   : > { %1302 = vadd.xlane.f32.xlu0 %v1301_v29 }
 0x202   : > { %v1310_v32 = vsel %vm1204_vm10, %v1282_v20, 0.0  ;;  %v1162_v51 = vpop.f32.mrf.mxu2 }
 0x203   : > { %v2809_v11 = vadd.f32 %v2720_v12, %v1162_v51 }
 0x205   : > { %v1159_v48 = vpop.f32.mrf.mxu1  ;;  %v1194_v25 = vmax.f32 %v2809_v11, 0.0  ;;  %v1229_v42 = vsel %vm1204_vm10, %v2809_v11, 0.0 }
 0x206   : > { %v2798_v52 = vadd.f32 %v2720_v12, %v1159_v48 }
 0x208   : > { %v1226_v17 = vsel %vm1204_vm10, %v2798_v52, 0.0  ;;  %v1193_v36 = vmax.f32 %v2798_v52, 0.0  ;;  %v1283_v14 = vmul.f32 %v2798_v52, %v2798_v52 }
 0x209   : > { %1218 = vadd.xlane.f32.xlu0 %v1217_v1 }
 0x20a   : > { %v1313_v13 = vsel %vm1204_vm10, %v1283_v14, 0.0  ;;  %v1165_v44 = vpop.f32.mrf.mxu2 }
 0x20b   : > { %v2830_v41 = vadd.f32 %v2720_v12, %v1165_v44 }
 0x20d   : > { %v2802_v50 = vpop.permute.xlu2 %1666  ;;  %v1195_v20 = vmax.f32 %v2830_v41, 0.0 }
 0x216   : > { %1676 = vrot.lane.b32.xlu1 %v1191_v26, %s2062_s27 }
 0x21d   : > { %1674 = vrot.lane.b32.xlu0 %v1190_v40, %s2062_s27  ;;  %v1285_v40 = vmul.f32 %v2830_v41, %v2830_v41 }
 0x21f   : > { %v1319_v28 = vsel %vm1204_vm10, %v1285_v40, 0.0 }
 0x225   : > { %1305 = vadd.xlane.f32.xlu2 %v1304_v61  ;;  %v2804_v7 = vpop.xlane.xlu1 %1206 }
 0x227   : > { %v1294_v10 = vpop.xlane.xlu0 %1293 }
 0x22d   : > { %1221 = vadd.xlane.f32.xlu2 %v1220_v34 }
 0x236   : > { %v2826_v47 = vpop.xlane.xlu0 %1209 }
 0x23d   : > { %v2813_v60 = vpop.permute.xlu1 %1668 }
 0x240   : > { %1308 = vadd.xlane.f32.xlu1 %v1307_v45  ;;  %v1168_v45 = vpop.f32.mrf.mxu2 }
 0x245   : > { %1678 = vrot.lane.b32.xlu2 %v1192_v59, %s2062_s27  ;;  %v2854_v59 = vadd.f32 %v2720_v12, %v1168_v45 }
 0x247   : > { %1311 = vadd.xlane.f32.xlu0 %v1310_v32  ;;  %v1232_v32 = vsel %vm1204_vm10, %v2830_v41, 0.0  ;;  %v1235_v48 = vsel %vm1204_vm10, %v2854_v59, 0.0  ;;  %v1196_v2 = vmax.f32 %v2854_v59, 0.0  ;;  %v1286_v22 = vmul.f32 %v2854_v59, %v2854_v59 }
 0x248   : > { %1224 = vadd.xlane.f32.xlu1 %v1223_v6  ;;  %v1171_v6 = vpop.f32.mrf.mxu2 }
 0x249   : > { %v1671_v61 = vpop.permute.xlu0 %1670  ;;  %v1322_v19 = vsel %vm1204_vm10, %v1286_v22, 0.0 }
 0x24f   : > { %1227 = vadd.xlane.f32.xlu0 %v1226_v17  ;;  %v2806_v46 = vpop.xlane.xlu2 %1296  ;;  %v2863_v17 = vadd.f32 %v2720_v12, %v1171_v6  ;;  %v2933_v6 = vmul.f32 %v2817_v53, %v2826_v47 }
 0x250   : > { %v1174_v51 = vpop.f32.mrf.mxu2 }
 0x251   : > { %v1197_v21 = vmax.f32 %v2863_v17, 0.0  ;;  %v1238_v8 = vsel %vm1204_vm10, %v2863_v17, 0.0  ;;  %v2874_v27 = vadd.f32 %v2720_v12, %v1174_v51 }
 0x253   : > { %v1241_v40 = vsel %vm1204_vm10, %v2874_v27, 0.0 }
 0x257   : > { %v1213_v15 = vpop.xlane.xlu2 %1212 }
 0x258   : > { %v1262_v58 = vmul.f32 %v2817_v53, %v1213_v15 }
 0x25a   : > { %v1358_v37 = vmul.f32 %v1262_v58, %v1262_v58  ;;  %v1406_v57 = vsub.f32 %v2745_v23, %v1262_v58  ;;  %v1284_v23 = vmul.f32 %v2809_v11, %v2809_v11 }
 0x25c   : > { %v1316_v9 = vsel %vm1204_vm10, %v1284_v23, 0.0 }
 0x261   : > { %1682 = vrot.lane.b32.xlu1 %v1194_v25, %s2062_s27  ;;  %v1177_v25 = vpop.f32.mrf.mxu2 }
 0x263   : > { %1680 = vrot.lane.b32.xlu0 %v1193_v36, %s2062_s27 }
 0x268   : > { %v1300_v43 = vpop.xlane.xlu1 %1299 }
 0x269   : > { %v1342_v38 = vmul.f32 %v1300_v43, %v2817_v53  ;;  %v1180_v15 = vpop.f32.mrf.mxu2  ;;  %v1288_v43 = vmul.f32 %v2874_v27, %v2874_v27 }
 0x26b   : > { %v1374_v24 = vsub.f32 %v1342_v38, %v1358_v37  ;;  %v2882_v38 = vmul.f32 %v2817_v53, %v2804_v7  ;;  %v1328_v14 = vsel %vm1204_vm10, %v1288_v43, 0.0 }
 0x26d   : > { %v1390_v16 = vmax.f32 %v1374_v24, 0.0  ;;  %v2885_v24 = vpop.permute.xlu2 %1672 }
 0x26e   : > { %1314 = vadd.xlane.f32.xlu2 %v1313_v13  ;;  %v1356_v13 = vmul.f32 %v2882_v38, %v2882_v38 }
 0x26f   : > { %v1422_v35 = vadd.f32 1e-05, %v1390_v16  ;;  %v1287_v16 = vmul.f32 %v2863_v17, %v2863_v17 }
 0x270   : > { %v1216_v36 = vpop.xlane.xlu1 %1215 }
 0x271   : > { %2020 = vrsqrt.f32 %v1422_v35  ;;  %vm1462_vm11 = vweird.f32 %v1422_v35 }
 0x274   : > { %v1303_v58 = vpop.xlane.xlu0 %1302 }
 0x276   : > { %1230 = vadd.xlane.f32.xlu2 %v1229_v42  ;;  %v2893_v42 = vadd.f32 %v2720_v12, %v1177_v25  ;;  %v1357_v25 = vmul.f32 %v2933_v6, %v2933_v6 }
 0x277   : > { %v2021_v33 = vpop.eup %2020 }
 0x278   : > { %v1457_v31 = vmul.f32 %v2021_v33, %v1422_v35  ;;  %vm1463_vm9 = vweird.f32 %v2021_v33  ;;  %v1340_v35 = vmul.f32 %v1294_v10, %v2817_v53  ;;  %v1244_v10 = vsel %vm1204_vm10, %v2893_v42, 0.0 }
 0x279   : > { %vm1464_vm12 = vmor %vm1462_vm11, %vm1463_vm9 }
 0x27a   : > { %v1458_v63 = vmul.f32 %v2021_v33, %v1457_v31 }
 0x27c   : > { %v1459_v54 = vmul.f32 0.5, %v1458_v63  ;;  %v1219_v31 = vpop.xlane.xlu0 %1218  ;;  %v1325_v63 = vsel %vm1204_vm10, %v1287_v16, 0.0 }
 0x27e   : > { %v1460_v56 = vsub.f32 1.5, %v1459_v54  ;;  %v1198_v54 = vmax.f32 %v2874_v27, 0.0 }
 0x280   : > { %v1461_v0 = vmul.f32 %v2021_v33, %v1460_v56  ;;  %v1372_v56 = vsub.f32 %v1340_v35, %v1356_v13 }
 0x282   : > { %v1465_v29 = vsel %vm1464_vm12, %v2021_v33, %v1461_v0  ;;  %v1183_v33 = vpop.f32.mrf.mxu2 }
 0x283   : > { %v1598_v1 = vmul.f32 %v1465_v29, %v1406_v57  ;;  %v2901_v44 = vadd.f32 %v2720_v12, %v1183_v33  ;;  %v2906_v57 = vmul.f32 %v2817_v53, %v1216_v36  ;;  %v1388_v29 = vmax.f32 %v1372_v56, 0.0 }
 0x285   : > { %v1617_v26 = vmul.f32 %v2835_v5, %v1598_v1  ;;  %v1291_v1 = vmul.f32 %v2901_v44, %v2901_v44 }
 0x287   : > { %v1636_v39 = vadd.f32 %v2840_v30, %v1617_v26  ;;  %v2911_v26 = vadd.f32 %v2720_v12, %v1180_v15  ;;  %v1337_v45 = vsel %vm1204_vm10, %v1291_v1, 0.0  ;;  %v1199_v1 = vmax.f32 %v2893_v42, 0.0 }
 0x288   : > { %v2878_v37 = vpop.permute.xlu1 %1676 }
 0x289   : > { %v2848_v34 = vadd.f32 %v1671_v61, %v1636_v39  ;;  %v1359_v39 = vmul.f32 %v2906_v57, %v2906_v57  ;;  %v1343_v61 = vmul.f32 %v1303_v58, %v2817_v53  ;;  %v1290_v12 = vmul.f32 %v2911_v26, %v2911_v26 }
 0x28b   : > { %1317 = vadd.xlane.f32.xlu1 %v1316_v9 }
 0x28d   : > { %1320 = vadd.xlane.f32.xlu0 %v1319_v28  ;;  %v2920_v28 = vadd.f32 1e-05, %v1388_v29 }
 0x28e   : > { %1684 = vrot.lane.b32.xlu2 %v1195_v20, %s2062_s27  ;;  %v1375_v20 = vsub.f32 %v1343_v61, %v1359_v39 }
 0x28f   : > { %v2913_v23 = vpop.permute.xlu0 %1674  ;;  %2022 = vrsqrt.f32 %v2920_v28  ;;  %vm1442_vm14 = vweird.f32 %v2920_v28 }
 0x290   : > { %v1391_v22 = vmax.f32 %v1375_v20, 0.0 }
 0x292   : > { %v2943_v15 = vadd.f32 1e-05, %v1391_v22  ;;  %v1289_v22 = vmul.f32 %v2893_v42, %v2893_v42 }
 0x293   : > { %1233 = vadd.xlane.f32.xlu1 %v1232_v32 }
 0x294   : > { %2024 = vrsqrt.f32 %v2943_v15  ;;  %vm1472_vm2 = vweird.f32 %v2943_v15 }
 0x295   : > { %1236 = vadd.xlane.f32.xlu0 %v1235_v48  ;;  %v2023_v36 = vpop.eup %2022 }
 0x296   : > { %v1437_v43 = vmul.f32 %v2023_v36, %v2920_v28  ;;  %vm1443_vm13 = vweird.f32 %v2023_v36 }
 0x297   : > { %vm1444_vm15 = vmor %vm1442_vm14, %vm1443_vm13 }
 0x298   : > { %v1306_v0 = vpop.xlane.xlu2 %1305 }
 0x299   : > { %v1344_v33 = vmul.f32 %v1306_v0, %v2817_v53 }
 0x2a0   : > { %v2928_v48 = vpop.xlane.xlu2 %1221 }
 0x2a8   : > { %v2949_v16 = vpop.permute.xlu2 %1678 }
 0x2a9   : > { %1686 = vrot.lane.b32.xlu0 %v1196_v2, %s2062_s27 }
 0x2ac   : > { %1688 = vrot.lane.b32.xlu1 %v1197_v21, %s2062_s27  ;;  %v1334_v21 = vsel %vm1204_vm10, %v1290_v12, 0.0 }
 0x2b3   : > { %v2895_v7 = vpop.xlane.xlu1 %1308 }
 0x2b7   : > { %1323 = vadd.xlane.f32.xlu2 %v1322_v19  ;;  %v1341_v19 = vmul.f32 %v2806_v46, %v2817_v53  ;;  %v1250_v46 = vsel %vm1204_vm10, %v2901_v44, 0.0 }
 0x2b9   : > { %v1373_v58 = vsub.f32 %v1341_v19, %v1357_v25 }
 0x2ba   : > { %v1312_v2 = vpop.xlane.xlu0 %1311 }
 0x2bb   : > { %v1225_v9 = vpop.xlane.xlu1 %1224  ;;  %v1389_v35 = vmax.f32 %v1373_v58, 0.0 }
 0x2bc   : > { %v2926_v32 = vmul.f32 %v2817_v53, %v1225_v9 }
 0x2be   : > { %v1362_v51 = vmul.f32 %v2926_v32, %v2926_v32 }
 0x2bf   : > { %1239 = vadd.xlane.f32.xlu2 %v1238_v8  ;;  %v1346_v8 = vmul.f32 %v1312_v2, %v2817_v53 }
 0x2c1   : > { %v1378_v47 = vsub.f32 %v1346_v8, %v1362_v51 }
 0x2c2   : > { %v1228_v29 = vpop.xlane.xlu0 %1227 }
 0x2c3   : > { %v1394_v13 = vmax.f32 %v1378_v47, 0.0  ;;  %v2967_v0 = vmul.f32 %v2817_v53, %v1228_v29  ;;  %v1404_v29 = vsub.f32 %v2726_v4, %v2882_v38  ;;  %v1247_v38 = vsel %vm1204_vm10, %v2911_v26, 0.0 }
 0x2c5   : > { %v2957_v56 = vadd.f32 1e-05, %v1394_v13  ;;  %v1331_v13 = vsel %vm1204_vm10, %v1289_v22, 0.0  ;;  %v1345_v22 = vmul.f32 %v2895_v7, %v2817_v53 }
 0x2c7   : > { %2026 = vrsqrt.f32 %v2957_v56  ;;  %vm1502_vm6 = vweird.f32 %v2957_v56 }
 0x2d3   : > { %1329 = vadd.xlane.f32.xlu0 %v1328_v14  ;;  %v2947_v14 = vmul.f32 %v2817_v53, %v1219_v31  ;;  %v2959_v31 = vadd.f32 1e-05, %v1389_v35  ;;  %v2969_v9 = vpop.permute.xlu1 %1682 }
 0x2d5   : > { %2028 = vrsqrt.f32 %v2959_v31  ;;  %vm1452_vm7 = vweird.f32 %v2959_v31 }
 0x2d6   : > { %1326 = vadd.xlane.f32.xlu1 %v1325_v63  ;;  %v1438_v63 = vmul.f32 %v2023_v36, %v1437_v43  ;;  %v2986_v43 = vpop.permute.xlu0 %1680 }
 0x2d7   : > { %1690 = vrot.lane.b32.xlu2 %v1198_v54, %s2062_s27  ;;  %v1360_v54 = vmul.f32 %v2947_v14, %v2947_v14 }
 0x2d8   : > { %v1439_v39 = vmul.f32 0.5, %v1438_v63 }
 0x2da   : > { %v1440_v2 = vsub.f32 1.5, %v1439_v39 }
 0x2db   : > { %1245 = vadd.xlane.f32.xlu0 %v1244_v10  ;;  %v1376_v10 = vsub.f32 %v1344_v33, %v1360_v54 }
 0x2dc   : > { %v1441_v58 = vmul.f32 %v2023_v36, %v1440_v2  ;;  %v1200_v2 = vmax.f32 %v2911_v26, 0.0 }
 0x2dd   : > { %v1392_v12 = vmax.f32 %v1376_v10, 0.0 }
 0x2de   : > { %1242 = vadd.xlane.f32.xlu1 %v1241_v40  ;;  %v2962_v40 = vpop.eup %2024  ;;  %v1445_v10 = vsel %vm1444_vm15, %v2023_v36, %v1441_v58 }
 0x2df   : > { %v2980_v19 = vadd.f32 1e-05, %v1392_v12  ;;  %v2982_v8 = vpop.eup %2026  ;;  %vm1473_vm0 = vweird.f32 %v2962_v40 }
 0x2e0   : > { %v2984_v47 = vpop.eup %2028  ;;  %v1497_v33 = vmul.f32 %v2982_v8, %v2957_v56  ;;  %vm1474_vm3 = vmor %vm1472_vm2, %vm1473_vm0  ;;  %vm1503_vm4 = vweird.f32 %v2982_v8 }
 0x2e1   : > { %v1315_v61 = vpop.xlane.xlu2 %1314  ;;  %2030 = vrsqrt.f32 %v2980_v19  ;;  %v1447_v63 = vmul.f32 %v2984_v47, %v2959_v31  ;;  %vm1453_vm5 = vweird.f32 %v2984_v47  ;;  %vm1504_vm8 = vmor %vm1502_vm6, %vm1503_vm4  ;;  %v1405_v31 = vsub.f32 %v2738_v62, %v2933_v6 }
 0x2e2   : > { %v1347_v20 = vmul.f32 %v1315_v61, %v2817_v53  ;;  %v1498_v39 = vmul.f32 %v2982_v8, %v1497_v33  ;;  %vm1454_vm1 = vmor %vm1452_vm7, %vm1453_vm5  ;;  %vm1482_vm11 = vweird.f32 %v2980_v19 }
 0x2e3   : > { %1338 = vadd.xlane.f32.xlu0 %v1337_v45  ;;  %v1467_v45 = vmul.f32 %v2962_v40, %v2943_v15  ;;  %v1448_v28 = vmul.f32 %v2984_v47, %v1447_v63  ;;  %v1407_v15 = vsub.f32 %v2758_v49, %v2906_v57 }
 0x2e5   : > { %v1468_v51 = vmul.f32 %v2962_v40, %v1467_v45  ;;  %v1596_v45 = vmul.f32 %v1445_v10, %v1404_v29 }
 0x2e6   : > { %1335 = vadd.xlane.f32.xlu1 %v1334_v21  ;;  %v1363_v21 = vmul.f32 %v2967_v0, %v2967_v0 }
 0x2e7   : > { %v1469_v35 = vmul.f32 0.5, %v1468_v51  ;;  %v3001_v12 = vpop.eup %2030  ;;  %v1499_v51 = vmul.f32 0.5, %v1498_v39 }
 0x2e8   : > { %v1379_v25 = vsub.f32 %v1347_v20, %v1363_v21  ;;  %v3005_v20 = vmul.f32 %v2817_v53, %v2928_v48  ;;  %v1449_v48 = vmul.f32 0.5, %v1448_v28  ;;  %v1477_v58 = vmul.f32 %v3001_v12, %v2980_v19 }
 0x2e9   : > { %v1500_v10 = vsub.f32 1.5, %v1499_v51  ;;  %v1231_v29 = vpop.xlane.xlu2 %1230  ;;  %vm1483_vm9 = vweird.f32 %v3001_v12  ;;  %v1408_v19 = vsub.f32 %v2768_v18, %v2947_v14 }
 0x2ea   : > { %v1395_v54 = vmax.f32 %v1379_v25, 0.0  ;;  %v1361_v7 = vmul.f32 %v3005_v20, %v3005_v20  ;;  %v1450_v39 = vsub.f32 1.5, %v1449_v48  ;;  %v1478_v28 = vmul.f32 %v3001_v12, %v1477_v58  ;;  %vm3079_vm12 = vmor %vm1482_vm11, %vm1483_vm9 }
 0x2ec   : > { %v2999_v61 = vadd.f32 1e-05, %v1395_v54  ;;  %v1377_v54 = vsub.f32 %v1345_v22, %v1361_v7  ;;  %v1451_v49 = vmul.f32 %v2984_v47, %v1450_v39  ;;  %v1479_v57 = vmul.f32 0.5, %v1478_v28 }
 0x2ee   : > { %1251 = vadd.xlane.f32.xlu1 %v1250_v46  ;;  %2032 = vrsqrt.f32 %v2999_v61  ;;  %vm1512_vm2 = vweird.f32 %v2999_v61 }
 0x2f7   : > { %1692 = vrot.lane.b32.xlu0 %v1199_v1, %s2062_s27  ;;  %v1470_v1 = vsub.f32 1.5, %v1469_v35 }
 0x2f9   : > { %v1471_v21 = vmul.f32 %v2962_v40, %v1470_v1 }
 0x2fb   : > { %v1475_v63 = vsel %vm1474_vm3, %v2962_v40, %v1471_v21  ;;  %v1393_v40 = vmax.f32 %v1377_v54, 0.0  ;;  %v1501_v21 = vmul.f32 %v2982_v8, %v1500_v10 }
 0x2fd   : > { %v1505_v56 = vsel %vm1504_vm8, %v2982_v8, %v1501_v21 }
 0x2fe   : > { %v1318_v46 = vpop.xlane.xlu1 %1317 }
 0x2ff   : > { %v1348_v51 = vmul.f32 %v1318_v46, %v2817_v53  ;;  %v1455_v46 = vsel %vm1454_vm1, %v2984_v47, %v1451_v49 }
 0x300   : > { %1332 = vadd.xlane.f32.xlu2 %v1331_v13  ;;  %v1321_v36 = vpop.xlane.xlu0 %1320  ;;  %v1615_v13 = vmul.f32 %v2835_v5, %v1596_v45  ;;  %v1597_v39 = vmul.f32 %v1455_v46, %v1405_v31 }
 0x301   : > { %v1349_v35 = vmul.f32 %v1321_v36, %v2817_v53  ;;  %v3035_v36 = vpop.eup %2032 }
 0x302   : > { %v1507_v48 = vmul.f32 %v3035_v36, %v2999_v61  ;;  %vm1513_vm15 = vweird.f32 %v3035_v36 }
 0x303   : > { %vm1514_vm3 = vmor %vm1512_vm2, %vm1513_vm15 }
 0x304   : > { %v1508_v54 = vmul.f32 %v3035_v36, %v1507_v48 }
 0x306   : > { %v1234_v4 = vpop.xlane.xlu1 %1233  ;;  %v1509_v6 = vmul.f32 0.5, %v1508_v54 }
 0x307   : > { %v3015_v25 = vmul.f32 %v2817_v53, %v1234_v4  ;;  %1694 = vrot.lane.b32.xlu1 %v1200_v2, %s2062_s27  ;;  %v1634_v2 = vadd.f32 %v2840_v30, %v1615_v13  ;;  %v3038_v4 = vmul.f32 %v2817_v53, %v1231_v29  ;;  %v3068_v29 = vld [vmem:[%s3285_s9] ss:$0 sm:$0xff] }
 0x308   : > { %1248 = vadd.xlane.f32.xlu2 %v1247_v38  ;;  %v1599_v38 = vmul.f32 %v1475_v63, %v1407_v15  ;;  %v1410_v63 = vsub.f32 %v2787_v3, %v2926_v32  ;;  %v1510_v48 = vsub.f32 1.5, %v1509_v6 }
 0x309   : > { %v1365_v33 = vmul.f32 %v3015_v25, %v3015_v25  ;;  %v1714_v58 = vadd.f32 %v2802_v50, %v1634_v2  ;;  %v1364_v13 = vmul.f32 %v3038_v4, %v3038_v4 }
 0x30a   : > { %v1618_v7 = vmul.f32 %v2835_v5, %v1599_v38  ;;  %v1511_v14 = vmul.f32 %v3035_v36, %v1510_v48 }
 0x30b   : > { %v1381_v1 = vsub.f32 %v1349_v35, %v1365_v33  ;;  %v3056_v35 = vadd.f32 1e-05, %v1393_v40  ;;  %v1480_v33 = vsub.f32 1.5, %v1479_v57  ;;  %v1380_v50 = vsub.f32 %v1348_v51, %v1364_v13 }
 0x30c   : > { %v1730_v10 = vmax.f32 %v1714_v58, 0.0  ;;  %v1637_v8 = vadd.f32 %v2840_v30, %v1618_v7  ;;  %v1616_v40 = vmul.f32 %v2835_v5, %v1597_v39  ;;  %v1237_v39 = vpop.xlane.xlu0 %1236 }
 0x30d   : > { %v1397_v45 = vmax.f32 %v1381_v1, 0.0  ;;  %v1602_v1 = vmul.f32 %v1505_v56, %v1410_v63  ;;  %v1481_v3 = vmul.f32 %v3001_v12, %v1480_v33  ;;  %v1396_v62 = vmax.f32 %v1380_v50, 0.0  ;;  %v1685_v50 = vpop.permute.xlu2 %1684 }
 0x30e   : > { %v1750_v15 = vmul.f32 %v3068_v29, %v1730_v10  ;;  %v1717_v2 = vadd.f32 %v2885_v24, %v1637_v8  ;;  %v1201_v24 = vmax.f32 %v2901_v44, 0.0  ;;  %v1413_v63 = vsub.f32 %v2830_v41, %v3015_v25 }
 0x30f   : > { %v3042_v22 = vadd.f32 1e-05, %v1397_v45  ;;  %v1621_v28 = vmul.f32 %v2835_v5, %v1602_v1  ;;  %v1485_v21 = vsel %vm3079_vm12, %v3001_v12, %v1481_v3  ;;  %v3087_v49 = vadd.f32 1e-05, %v1396_v62 }
 0x310   : > { %v1766_v58 = vsel %vm1204_vm10, %v1750_v15, 0.0  ;;  %v1733_v7 = vmax.f32 %v1717_v2, 0.0  ;;  %v1635_v12 = vadd.f32 %v2840_v30, %v1616_v40  ;;  %v1600_v46 = vmul.f32 %v1485_v21, %v1408_v19 }
 0x311   : > { %2034 = vrsqrt.f32 %v3042_v22  ;;  %v1640_v56 = vadd.f32 %v2840_v30, %v1621_v28  ;;  %vm1532_vm14 = vweird.f32 %v3042_v22  ;;  %v1515_v41 = vsel %vm1514_vm3, %v3035_v36, %v1511_v14 }
 0x312   : > { %2036 = vrsqrt.f32 %v3056_v35  ;;  %v1753_v54 = vmul.f32 %v3068_v29, %v1733_v7  ;;  %v1619_v3 = vmul.f32 %v2835_v5, %v1600_v46  ;;  %vm1492_vm5 = vweird.f32 %v3056_v35 }
 0x313   : > { %2038 = vrsqrt.f32 %v3087_v49  ;;  %v1720_v10 = vadd.f32 %v2949_v16, %v1640_v56  ;;  %v1411_v16 = vsub.f32 %v2798_v52, %v2967_v0  ;;  %vm1522_vm8 = vweird.f32 %v3087_v49 }
 0x314   : > { %v1775_v61 = vsel %vm1204_vm10, %v1753_v54, 0.0  ;;  %v1638_v36 = vadd.f32 %v2840_v30, %v1619_v3 }
 0x315   : > { %v1736_v62 = vmax.f32 %v1720_v10, 0.0  ;;  %v1603_v28 = vmul.f32 %v1515_v41, %v1411_v16  ;;  %v1409_v10 = vsub.f32 %v2773_v55, %v3005_v20  ;;  %v1412_v16 = vsub.f32 %v2809_v11, %v3038_v4 }
 0x316   : > { %v1718_v19 = vadd.f32 %v2913_v23, %v1638_v36 }
 0x317   : > { %v2035_v47 = vpop.eup %2034  ;;  %v1756_v52 = vmul.f32 %v3068_v29, %v1736_v62  ;;  %v1622_v48 = vmul.f32 %v2835_v5, %v1603_v28  ;;  %v1732_v62 = vmax.f32 %v2848_v34, 0.0 }
 0x318   : > { %v1527_v32 = vmul.f32 %v2035_v47, %v3042_v22  ;;  %v3089_v51 = vpop.eup %2036  ;;  %vm1533_vm13 = vweird.f32 %v2035_v47  ;;  %v1715_v22 = vadd.f32 %v2813_v60, %v1635_v12  ;;  %v3120_v60 = vmul.f32 %v2817_v53, %v1237_v39 }
 0x319   : > { %v1487_v33 = vmul.f32 %v3089_v51, %v3056_v35  ;;  %vm1534_vm0 = vmor %vm1532_vm14, %vm1533_vm13  ;;  %vm1493_vm4 = vweird.f32 %v3089_v51  ;;  %v1752_v34 = vmul.f32 %v3068_v29, %v1732_v62 }
 0x31a   : > { %v1528_v45 = vmul.f32 %v2035_v47, %v1527_v32  ;;  %v1731_v32 = vmax.f32 %v1715_v22, 0.0  ;;  %v1366_v38 = vmul.f32 %v3120_v60, %v3120_v60  ;;  %vm1494_vm6 = vmor %vm1492_vm5, %vm1493_vm4 }
 0x31b   : > { %v1488_v8 = vmul.f32 %v3089_v51, %v1487_v33  ;;  %v1734_v33 = vmax.f32 %v1718_v19, 0.0 }
 0x31c   : > { %v1529_v57 = vmul.f32 0.5, %v1528_v45  ;;  %v1751_v21 = vmul.f32 %v3068_v29, %v1731_v32 }
 0x31d   : > { %v1489_v15 = vmul.f32 0.5, %v1488_v8 }
 0x31e   : > { %v1530_v13 = vsub.f32 1.5, %v1529_v57  ;;  %v1769_v12 = vsel %vm1204_vm10, %v1751_v21, 0.0  ;;  %v3159_v36 = vpop.permute.xlu1 %1688  ;;  %v1772_v21 = vsel %vm1204_vm10, %v1752_v34, 0.0 }
 0x31f   : > { %v1490_v57 = vsub.f32 1.5, %v1489_v15 }
 0x320   : > { %v1531_v18 = vmul.f32 %v2035_v47, %v1530_v13  ;;  %1696 = vrot.lane.b32.xlu2 %v1201_v24, %s2062_s27  ;;  %v1784_v13 = vsel %vm1204_vm10, %v1756_v52, 0.0  ;;  %v1687_v52 = vpop.permute.xlu0 %1686 }
 0x321   : > { %1767 = vadd.xlane.f32.xlu0 %v1766_v58  ;;  %v1491_v46 = vmul.f32 %v3089_v51, %v1490_v57 }
 0x322   : > { %v1535_v31 = vsel %vm1534_vm0, %v2035_v47, %v1531_v18  ;;  %v3114_v47 = vpop.eup %2038  ;;  %v1641_v18 = vadd.f32 %v2840_v30, %v1622_v48 }
 0x323   : > { %v1605_v1 = vmul.f32 %v1535_v31, %v1413_v63  ;;  %v1517_v45 = vmul.f32 %v3114_v47, %v3087_v49  ;;  %v1754_v31 = vmul.f32 %v3068_v29, %v1734_v33  ;;  %vm1523_vm7 = vweird.f32 %v3114_v47 }
 0x324   : > { %v1721_v54 = vadd.f32 %v2986_v43, %v1641_v18  ;;  %vm1524_vm1 = vmor %vm1522_vm8, %vm1523_vm7 }
 0x325   : > { %v1624_v25 = vmul.f32 %v2835_v5, %v1605_v1  ;;  %v1518_v24 = vmul.f32 %v3114_v47, %v1517_v45  ;;  %v1778_v35 = vsel %vm1204_vm10, %v1754_v31, 0.0 }
 0x326   : > { %v1737_v39 = vmax.f32 %v1721_v54, 0.0 }
 0x327   : > { %v1643_v6 = vadd.f32 %v2840_v30, %v1624_v25  ;;  %v1519_v23 = vmul.f32 0.5, %v1518_v24 }
 0x328   : > { %v1757_v20 = vmul.f32 %v3068_v29, %v1737_v39 }
 0x329   : > { %1776 = vadd.xlane.f32.xlu0 %v1775_v61  ;;  %v1723_v0 = vadd.f32 %v1685_v50, %v1643_v6  ;;  %v1495_v50 = vsel %vm1494_vm6, %v3089_v51, %v1491_v46  ;;  %v1520_v1 = vsub.f32 1.5, %v1519_v23 }
 0x32a   : > { %v1324_v2 = vpop.xlane.xlu2 %1323  ;;  %v1601_v8 = vmul.f32 %v1495_v50, %v1409_v10  ;;  %v1787_v49 = vsel %vm1204_vm10, %v1757_v20, 0.0 }
 0x32b   : > { %v1350_v40 = vmul.f32 %v1324_v2, %v2817_v53  ;;  %v1739_v7 = vmax.f32 %v1723_v0, 0.0  ;;  %v1521_v41 = vmul.f32 %v3114_v47, %v1520_v1 }
 0x32c   : > { %v1620_v43 = vmul.f32 %v2835_v5, %v1601_v8 }
 0x32d   : > { %v1382_v58 = vsub.f32 %v1350_v40, %v1366_v38  ;;  %v1759_v63 = vmul.f32 %v3068_v29, %v1739_v7  ;;  %v1525_v25 = vsel %vm1524_vm1, %v3114_v47, %v1521_v41  ;;  %v1414_v47 = vsub.f32 %v2854_v59, %v3120_v60 }
 0x32e   : > { %v1639_v32 = vadd.f32 %v2840_v30, %v1620_v43  ;;  %v1604_v15 = vmul.f32 %v1525_v25, %v1412_v16 }
 0x32f   : > { %v1398_v56 = vmax.f32 %v1382_v58, 0.0  ;;  %v1793_v22 = vsel %vm1204_vm10, %v1759_v63, 0.0 }
 0x330   : > { %v1719_v45 = vadd.f32 %v2878_v37, %v1639_v32  ;;  %v1623_v2 = vmul.f32 %v2835_v5, %v1604_v15 }
 0x331   : > { %1785 = vadd.xlane.f32.xlu0 %v1784_v13  ;;  %v1430_v14 = vadd.f32 1e-05, %v1398_v56  ;;  %1770 = vadd.xlane.f32.xlu1 %v1769_v12 }
 0x332   : > { %v1240_v11 = vpop.xlane.xlu2 %1239  ;;  %v1735_v57 = vmax.f32 %v1719_v45, 0.0  ;;  %v1642_v59 = vadd.f32 %v2840_v30, %v1623_v2 }
 0x333   : > { %2040 = vrsqrt.f32 %v1430_v14  ;;  %vm1542_vm11 = vweird.f32 %v1430_v14  ;;  %v1271_v38 = vmul.f32 %v2817_v53, %v1240_v11 }
 0x334   : > { %v1755_v13 = vmul.f32 %v3068_v29, %v1735_v57  ;;  %v1722_v7 = vadd.f32 %v2969_v9, %v1642_v59 }
 0x335   : > { %v1367_v48 = vmul.f32 %v1271_v38, %v1271_v38  ;;  %v1415_v32 = vsub.f32 %v2863_v17, %v1271_v38 }
 0x336   : > { %v1781_v23 = vsel %vm1204_vm10, %v1755_v13, 0.0 }
 0x339   : > { %1794 = vadd.xlane.f32.xlu0 %v1793_v22  ;;  %v2041_v3 = vpop.eup %2040  ;;  %1779 = vadd.xlane.f32.xlu1 %v1778_v35 }
 0x33a   : > { %v1537_v51 = vmul.f32 %v2041_v3, %v1430_v14  ;;  %vm1543_vm9 = vweird.f32 %v2041_v3  ;;  %v1738_v14 = vmax.f32 %v1722_v7, 0.0 }
 0x33b   : > { %vm1544_vm12 = vmor %vm1542_vm11, %vm1543_vm9  ;;  %vm1834_vm9 = vcmask 7168  }
 0x33c   : > { %v1538_v55 = vmul.f32 %v2041_v3, %v1537_v51  ;;  %v1758_v10 = vmul.f32 %v3068_v29, %v1738_v14 }
 0x33e   : > { %v1539_v61 = vmul.f32 0.5, %v1538_v55  ;;  %v1790_v39 = vsel %vm1204_vm10, %v1758_v10, 0.0 }
 0x340   : > { %v1540_v6 = vsub.f32 1.5, %v1539_v61 }
 0x341   : > { %1788 = vadd.xlane.f32.xlu1 %v1787_v49 }
 0x342   : > { %v1541_v28 = vmul.f32 %v2041_v3, %v1540_v6 }
 0x344   : > { %v1545_v4 = vsel %vm1544_vm12, %v2041_v3, %v1541_v28 }
 0x345   : > { %v1606_v0 = vmul.f32 %v1545_v4, %v1414_v47 }
 0x346   : > { %v1330_v56 = vpop.xlane.xlu0 %1329 }
 0x347   : > { %v1625_v40 = vmul.f32 %v2835_v5, %v1606_v0  ;;  %v1352_v54 = vmul.f32 %v1330_v56, %v2817_v53 }
 0x349   : > { %1773 = vadd.xlane.f32.xlu2 %v1772_v21  ;;  %v1327_v60 = vpop.xlane.xlu1 %1326  ;;  %v1644_v19 = vadd.f32 %v2840_v30, %v1625_v40  ;;  %v1691_v21 = vpop.permute.xlu2 %1690 }
 0x34a   : > { %v1351_v37 = vmul.f32 %v1327_v60, %v2817_v53 }
 0x34b   : > { %v1724_v24 = vadd.f32 %v1687_v52, %v1644_v19 }
 0x34c   : > { %v1383_v58 = vsub.f32 %v1351_v37, %v1367_v48 }
 0x34d   : > { %v1740_v12 = vmax.f32 %v1724_v24, 0.0 }
 0x34e   : > { %v1399_v46 = vmax.f32 %v1383_v58, 0.0  ;;  %v1246_v22 = vpop.xlane.xlu0 %1245 }
 0x34f   : > { %v1760_v33 = vmul.f32 %v3068_v29, %v1740_v12  ;;  %v1273_v24 = vmul.f32 %v2817_v53, %v1246_v22 }
 0x350   : > { %v1431_v18 = vadd.f32 1e-05, %v1399_v46 }
 0x351   : > { %1782 = vadd.xlane.f32.xlu2 %v1781_v23  ;;  %v1243_v63 = vpop.xlane.xlu1 %1242  ;;  %v1796_v50 = vsel %vm1204_vm10, %v1760_v33, 0.0 }
 0x352   : > { %2042 = vrsqrt.f32 %v1431_v18  ;;  %v1272_v31 = vmul.f32 %v2817_v53, %v1243_v63  ;;  %1797 = vadd.xlane.f32.xlu1 %v1796_v50  ;;  %vm1552_vm14 = vweird.f32 %v1431_v18 }
 0x354   : > { %v1368_v9 = vmul.f32 %v1272_v31, %v1272_v31  ;;  %v1416_v59 = vsub.f32 %v2874_v27, %v1272_v31  ;;  %v1369_v27 = vmul.f32 %v1273_v24, %v1273_v24 }
 0x356   : > { %v1384_v1 = vsub.f32 %v1352_v54, %v1368_v9  ;;  %v1339_v16 = vpop.xlane.xlu0 %1338 }
 0x357   : > { %v1355_v28 = vmul.f32 %v1339_v16, %v2817_v53 }
 0x358   : > { %v2043_v8 = vpop.eup %2042  ;;  %v1400_v35 = vmax.f32 %v1384_v1, 0.0 }
 0x359   : > { %v1547_v3 = vmul.f32 %v2043_v8, %v1431_v18  ;;  %1791 = vadd.xlane.f32.xlu2 %v1790_v39  ;;  %v3181_v41 = vpop.xlane.xlu1 %1335  ;;  %vm1553_vm13 = vweird.f32 %v2043_v8 }
 0x35a   : > { %v1432_v51 = vadd.f32 1e-05, %v1400_v35  ;;  %vm1554_vm15 = vmor %vm1552_vm14, %vm1553_vm13 }
 0x35b   : > { %v1548_v43 = vmul.f32 %v2043_v8, %v1547_v3  ;;  %v1354_v3 = vmul.f32 %v3181_v41, %v2817_v53 }
 0x35c   : > { %2044 = vrsqrt.f32 %v1432_v51  ;;  %vm1562_vm2 = vweird.f32 %v1432_v51 }
 0x35d   : > { %v1549_v55 = vmul.f32 0.5, %v1548_v43 }
 0x35f   : > { %v1550_v20 = vsub.f32 1.5, %v1549_v55 }
 0x361   : > { %v1551_v25 = vmul.f32 %v2043_v8, %v1550_v20  ;;  %v1252_v61 = vpop.xlane.xlu1 %1251 }
 0x362   : > { %v2045_v62 = vpop.eup %2044  ;;  %v1275_v6 = vmul.f32 %v2817_v53, %v1252_v61 }
 0x363   : > { %v1555_v49 = vsel %vm1554_vm15, %v2043_v8, %v1551_v25  ;;  %v1557_v15 = vmul.f32 %v2045_v62, %v1432_v51  ;;  %vm1563_vm0 = vweird.f32 %v2045_v62 }
 0x364   : > { %v1371_v47 = vmul.f32 %v1275_v6, %v1275_v6  ;;  %v1607_v11 = vmul.f32 %v1555_v49, %v1415_v32  ;;  %vm1564_vm3 = vmor %vm1562_vm2, %vm1563_vm0  ;;  %v1419_v8 = vsub.f32 %v2901_v44, %v1275_v6 }
 0x365   : > { %v1558_v4 = vmul.f32 %v2045_v62, %v1557_v15 }
 0x366   : > { %v1387_v34 = vsub.f32 %v1355_v28, %v1371_v47  ;;  %v1626_v45 = vmul.f32 %v2835_v5, %v1607_v11 }
 0x367   : > { %v1559_v2 = vmul.f32 0.5, %v1558_v4 }
 0x368   : > { %v1403_v52 = vmax.f32 %v1387_v34, 0.0  ;;  %v1645_v0 = vadd.f32 %v2840_v30, %v1626_v45  ;;  %v1417_v45 = vsub.f32 %v2893_v42, %v1273_v24 }
 0x369   : > { %v1560_v40 = vsub.f32 1.5, %v1559_v2  ;;  %v1693_v41 = vpop.permute.xlu0 %1692 }
 0x36a   : > { %v1435_v17 = vadd.f32 1e-05, %v1403_v52  ;;  %v1725_v38 = vadd.f32 %v3159_v36, %v1645_v0 }
 0x36b   : > { %v1561_v57 = vmul.f32 %v2045_v62, %v1560_v40 }
 0x36c   : > { %2046 = vrsqrt.f32 %v1435_v17  ;;  %v1741_v60 = vmax.f32 %v1725_v38, 0.0  ;;  %vm1592_vm5 = vweird.f32 %v1435_v17 }
 0x36d   : > { %v1565_v19 = vsel %vm1564_vm3, %v2045_v62, %v1561_v57 }
 0x36e   : > { %v1608_v48 = vmul.f32 %v1565_v19, %v1416_v59  ;;  %v1761_v37 = vmul.f32 %v3068_v29, %v1741_v60 }
 0x370   : > { %v1627_v58 = vmul.f32 %v2835_v5, %v1608_v48  ;;  %v1799_v13 = vsel %vm1204_vm10, %v1761_v37, 0.0 }
 0x371   : > { %1800 = vadd.xlane.f32.xlu2 %v1799_v13 }
 0x372   : > { %v2047_v36 = vpop.eup %2046  ;;  %v1646_v7 = vadd.f32 %v2840_v30, %v1627_v58 }
 0x373   : > { %v1587_v56 = vmul.f32 %v2047_v36, %v1435_v17  ;;  %v1333_v12 = vpop.xlane.xlu2 %1332  ;;  %vm1593_vm4 = vweird.f32 %v2047_v36  ;;  %v3207_v17 = vld [vmem:[#allocation2] ss:$0 sm:$0xff] }
 0x374   : > { %v1353_v46 = vmul.f32 %v1333_v12, %v2817_v53  ;;  %v1726_v33 = vadd.f32 %v1691_v21, %v1646_v7  ;;  %vm1594_vm6 = vmor %vm1592_vm5, %vm1593_vm4 }
 0x375   : > { %v1588_v18 = vmul.f32 %v2047_v36, %v1587_v56 }
 0x376   : > { %v1385_v23 = vsub.f32 %v1353_v46, %v1369_v27  ;;  %v1742_v14 = vmax.f32 %v1726_v33, 0.0 }
 0x377   : > { %v1589_v63 = vmul.f32 0.5, %v1588_v18 }
 0x378   : > { %v1401_v50 = vmax.f32 %v1385_v23, 0.0  ;;  %v1762_v31 = vmul.f32 %v3068_v29, %v1742_v14 }
 0x379   : > { %v1590_v54 = vsub.f32 1.5, %v1589_v63  ;;  %v1695_v46 = vpop.permute.xlu1 %1694 }
 0x37a   : > { %v1433_v9 = vadd.f32 1e-05, %v1401_v50  ;;  %v1802_v10 = vsel %vm1204_vm10, %v1762_v31, 0.0 }
 0x37b   : > { %v1591_v1 = vmul.f32 %v2047_v36, %v1590_v54  ;;  %v1249_v22 = vpop.xlane.xlu2 %1248  ;;  %1803 = vadd.xlane.f32.xlu0 %v1802_v10 }
 0x37c   : > { %2048 = vrsqrt.f32 %v1433_v9  ;;  %v1274_v35 = vmul.f32 %v2817_v53, %v1249_v22  ;;  %vm1572_vm8 = vweird.f32 %v1433_v9 }
 0x37d   : > { %v1595_v39 = vsel %vm1594_vm6, %v2047_v36, %v1591_v1 }
 0x37e   : > { %v1611_v51 = vmul.f32 %v1595_v39, %v1419_v8  ;;  %v1370_v43 = vmul.f32 %v1274_v35, %v1274_v35  ;;  %v1418_v37 = vsub.f32 %v2911_v26, %v1274_v35 }
 0x380   : > { %v1386_v55 = vsub.f32 %v1354_v3, %v1370_v43  ;;  %v1630_v20 = vmul.f32 %v2835_v5, %v1611_v51 }
 0x382   : > { %v2049_v25 = vpop.eup %2048  ;;  %v1402_v16 = vmax.f32 %v1386_v55, 0.0  ;;  %v1649_v61 = vadd.f32 %v2840_v30, %v1630_v20 }
 0x383   : > { %v1567_v62 = vmul.f32 %v2049_v25, %v1433_v9  ;;  %v1697_v32 = vpop.permute.xlu2 %1696  ;;  %vm1573_vm7 = vweird.f32 %v2049_v25 }
 0x384   : > { %v1434_v44 = vadd.f32 1e-05, %v1402_v16  ;;  %v1729_v6 = vadd.f32 %v1697_v32, %v1649_v61  ;;  %vm1574_vm1 = vmor %vm1572_vm8, %vm1573_vm7 }
 0x385   : > { %v1568_v49 = vmul.f32 %v2049_v25, %v1567_v62 }
 0x386   : > { %2050 = vrsqrt.f32 %v1434_v44  ;;  %v1745_v15 = vmax.f32 %v1729_v6, 0.0  ;;  %vm1582_vm12 = vweird.f32 %v1434_v44 }
 0x387   : > { %v1569_v28 = vmul.f32 0.5, %v1568_v49 }
 0x388   : > { %v1765_v47 = vmul.f32 %v3068_v29, %v1745_v15 }
 0x389   : > { %v1570_v53 = vsub.f32 1.5, %v1569_v28 }
 0x38a   : > { %v1811_v11 = vsel %vm1204_vm10, %v1765_v47, 0.0 }
 0x38b   : > { %v1571_v4 = vmul.f32 %v2049_v25, %v1570_v53  ;;  %1812 = vadd.xlane.f32.xlu0 %v1811_v11 }
 0x38c   : > { %v2051_v34 = vpop.eup %2050 }
 0x38d   : > { %v1575_v2 = vsel %vm1574_vm1, %v2049_v25, %v1571_v4  ;;  %v1577_v52 = vmul.f32 %v2051_v34, %v1434_v44  ;;  %vm1583_vm11 = vweird.f32 %v2051_v34 }
 0x38e   : > { %v1609_v0 = vmul.f32 %v1575_v2, %v1417_v45  ;;  %vm1584_vm13 = vmor %vm1582_vm12, %vm1583_vm11 }
 0x38f   : > { %v1578_v40 = vmul.f32 %v2051_v34, %v1577_v52 }
 0x390   : > { %v1628_v38 = vmul.f32 %v2835_v5, %v1609_v0 }
 0x391   : > { %v1579_v21 = vmul.f32 0.5, %v1578_v40 }
 0x392   : > { %v1647_v42 = vadd.f32 %v2840_v30, %v1628_v38 }
 0x393   : > { %v1580_v59 = vsub.f32 1.5, %v1579_v21 }
 0x394   : > { %v1768_v57 = vpop.xlane.xlu0 %1767  ;;  %v1727_v19 = vadd.f32 %v1693_v41, %v1647_v42 }
 0x395   : > { %v1818_v60 = vadd.f32 %v3207_v17, %v1768_v57  ;;  %v1581_v48 = vmul.f32 %v2051_v34, %v1580_v59 }
 0x396   : > { %v1743_v24 = vmax.f32 %v1727_v19, 0.0 }
 0x397   : > { %1835 = vst.msk [vmem:[%s3215_s20] sm:$0xff] %vm1834_vm9, %v1818_v60  ;;  %v1585_v58 = vsel %vm1584_vm13, %v2051_v34, %v1581_v48 }
 0x398   : > { %v1610_v13 = vmul.f32 %v1585_v58, %v1418_v37  ;;  %v1763_v36 = vmul.f32 %v3068_v29, %v1743_v24 }
 0x39a   : > { %v1629_v7 = vmul.f32 %v2835_v5, %v1610_v13  ;;  %v1805_v56 = vsel %vm1204_vm10, %v1763_v36, 0.0 }
 0x39b   : > { %1806 = vadd.xlane.f32.xlu1 %v1805_v56 }
 0x39c   : > { %v1777_v12 = vpop.xlane.xlu0 %1776  ;;  %v1648_v33 = vadd.f32 %v2840_v30, %v1629_v7 }
 0x39d   : > { %v1821_v27 = vadd.f32 %v3207_v17, %v1777_v12 }
 0x39e   : > { %v1728_v26 = vadd.f32 %v1695_v46, %v1648_v33 }
 0x39f   : > { %1838 = vst.msk [vmem:[%s3215_s20 + $0x18] sm:$0xff] %vm1834_vm9, %v1821_v27 }
 0x3a0   : > { %v1744_v18 = vmax.f32 %v1728_v26, 0.0 }
 0x3a2   : > { %v1764_v14 = vmul.f32 %v3068_v29, %v1744_v18 }
 0x3a4   : > { %v1786_v23 = vpop.xlane.xlu0 %1785  ;;  %v1771_v63 = vpop.xlane.xlu1 %1770  ;;  %v1808_v50 = vsel %vm1204_vm10, %v1764_v14, 0.0 }
 0x3a5   : > { %v1824_v5 = vadd.f32 %v3207_v17, %v1786_v23  ;;  %v1819_v30 = vadd.f32 %v3207_v17, %v1771_v63  ;;  %1809 = vadd.xlane.f32.xlu2 %v1808_v50 }
 0x3a7   : > { %1841 = vst.msk [vmem:[%s3215_s20 + $0x30] sm:$0xff] %vm1834_vm9, %v1824_v5 }
 0x3a8   : > { %1836 = vst.msk [vmem:[%s3215_s20 + $0x8] sm:$0xff] %vm1834_vm9, %v1819_v30 }
 0x3ac   : > { %v1795_v31 = vpop.xlane.xlu0 %1794  ;;  %v1780_v29 = vpop.xlane.xlu1 %1779 }
 0x3ad   : > { %v1827_v54 = vadd.f32 %v3207_v17, %v1795_v31  ;;  %v1822_v9 = vadd.f32 %v3207_v17, %v1780_v29 }
 0x3af   : > { %1844 = vst.msk [vmem:[%s3215_s20 + $0x48] sm:$0xff] %vm1834_vm9, %v1827_v54 }
 0x3b0   : > { %1839 = vst.msk [vmem:[%s3215_s20 + $0x20] sm:$0xff] %vm1834_vm9, %v1822_v9 }
 0x3b4   : > { %v1789_v10 = vpop.xlane.xlu1 %1788 }
 0x3b5   : > { %v1825_v1 = vadd.f32 %v3207_v17, %v1789_v10 }
 0x3b7   : > { %1842 = vst.msk [vmem:[%s3215_s20 + $0x38] sm:$0xff] %vm1834_vm9, %v1825_v1 }
 0x3bc   : > { %v1774_v22 = vpop.xlane.xlu2 %1773 }
 0x3bd   : > { %v1820_v8 = vadd.f32 %v3207_v17, %v1774_v22 }
 0x3bf   : > { %1837 = vst.msk [vmem:[%s3215_s20 + $0x10] sm:$0xff] %vm1834_vm9, %v1820_v8 }
 0x3c4   : > { %v1783_v35 = vpop.xlane.xlu2 %1782 }
 0x3c5   : > { %v1823_v39 = vadd.f32 %v3207_v17, %v1783_v35  ;;  %v1798_v3 = vpop.xlane.xlu1 %1797 }
 0x3c6   : > { %v1828_v51 = vadd.f32 %v3207_v17, %v1798_v3 }
 0x3c7   : > { %1840 = vst.msk [vmem:[%s3215_s20 + $0x28] sm:$0xff] %vm1834_vm9, %v1823_v39 }
 0x3c8   : > { %1845 = vst.msk [vmem:[%s3215_s20 + $0x50] sm:$0xff] %vm1834_vm9, %v1828_v51 }
 0x3cc   : > { %v1792_v43 = vpop.xlane.xlu2 %1791 }
 0x3cd   : > { %v1826_v55 = vadd.f32 %v3207_v17, %v1792_v43 }
 0x3cf   : > { %1843 = vst.msk [vmem:[%s3215_s20 + $0x40] sm:$0xff] %vm1834_vm9, %v1826_v55 }
 0x3e4   : > { %v1801_v20 = vpop.xlane.xlu2 %1800 }
 0x3e5   : > { %v1829_v25 = vadd.f32 %v3207_v17, %v1801_v20 }
 0x3e7   : > { %1846 = vst.msk [vmem:[%s3215_s20 + $0x58] sm:$0xff] %vm1834_vm9, %v1829_v25 }
 0x3ee   : > { %v1804_v16 = vpop.xlane.xlu0 %1803 }
 0x3ef   : > { %v1830_v61 = vadd.f32 %v3207_v17, %v1804_v16 }
 0x3f1   : > { %1847 = vst.msk [vmem:[%s3215_s20 + $0x60] sm:$0xff] %vm1834_vm9, %v1830_v61 }
 0x3fe   : > { %v1813_v62 = vpop.xlane.xlu0 %1812 }
 0x3ff   : > { %v1833_v32 = vadd.f32 %v3207_v17, %v1813_v62 }
 0x401   : > { %1850 = vst.msk [vmem:[%s3215_s20 + $0x78] sm:$0xff] %vm1834_vm9, %v1833_v32 }
 0x40e   : > { %v1807_v44 = vpop.xlane.xlu1 %1806 }
 0x40f   : > { %v1831_v6 = vadd.f32 %v3207_v17, %v1807_v44 }
 0x411   : > { %1848 = vst.msk [vmem:[%s3215_s20 + $0x68] sm:$0xff] %vm1834_vm9, %v1831_v6 }
 0x418   : > { %v1810_v49 = vpop.xlane.xlu2 %1809 }
 0x419   : > { %v1832_v15 = vadd.f32 %v3207_v17, %v1810_v49 }
 0x41b   : > { %1849 = vst.msk [vmem:[%s3215_s20 + $0x70] sm:$0xff] %vm1834_vm9, %v1832_v15 }
 0x41c PF: > { %s23_s19 = sadd.s32 1, %s2058_s19  }
 0x41d   : > { %p20_p4 = scmp.ge.s32.totalorder %s23_s19, 4  }
 0x41f   :  { %22 = sbr.rel (!%p20_p4) target bundleno = 3 (0x3), region = 94 }

</bundles_post_ra>
